<compile_context>
chip_gen: v7x
topology: tpu7x:2x2x1
jax: 0.10.0
libtpu: 0.0.40
codegen_flags: <defaults>
</compile_context>

<pallas_src>
import jax
import jax.numpy as jnp
from jax.experimental import pallas as pl
from jax.experimental.pallas import tpu as pltpu


def _round_up(n, m):
    return (n + m - 1) // m * m


def _static_int(x, fallback):
    """Concrete int when available (eager), otherwise a safe static fallback."""
    try:
        return int(x)
    except Exception:
        return int(fallback)


def _vmem_limit_bytes():
    """~96 MiB on v5e/v6e (128 MiB physical), ~40 MiB on v7x (64 MiB physical)."""
    try:
        cap = int(getattr(pltpu.get_tpu_info(), "vmem_capacity_bytes", 128 << 20))
    except Exception:
        cap = 128 << 20
    return max(32 << 20, min(cap - (24 << 20), 96 << 20))


def _tile_schedule(dst, src, tm, tk, n_row_tiles, n_col_tiles):
    """Per output-row-tile schedule of nonzero contraction tiles.

    Returns (colids, counts):
      colids[i, k] = k-th nonzero column-tile index of row tile i (ascending);
                     positions k >= counts[i] are clamped to the last valid index
                     so consecutive grid steps revisit the same block (no new DMA).
      counts[i]    = number of nonzero column tiles of row tile i.
    """
    occ = (jnp.zeros((n_row_tiles, n_col_tiles), jnp.int32)
           .at[dst // tm, src // tk].add(1)) > 0
    counts = occ.sum(axis=-1).astype(jnp.int32)
    col = jnp.arange(n_col_tiles, dtype=jnp.int32)
    order = jnp.argsort(jnp.where(occ, col, col + n_col_tiles), axis=-1).astype(jnp.int32)
    last = jnp.take_along_axis(order, jnp.maximum(counts - 1, 0)[:, None], axis=-1)
    colids = jnp.where(col[None, :] < counts[:, None], order, last)
    return colids, counts


# ---------------------------------------------------------------------------
# Kernel 1: block-sparse pooling of the projected features.
#   grid = (nc_p // tm, kmax_pool); axis 0 parallel, axis 1 reduction.
#   acc(tm, 2*cout_p) += P(tm, tk_pool) @ xw(tk_pool, 2*cout_p)   (bf16 -> f32)
#   columns [0:cout_p] of the result are h_self, [cout_p:] are h_nbr.
# ---------------------------------------------------------------------------
def _pool_project_kernel(cids_ref, cnts_ref, p_ref, xw_ref, h_ref, acc_ref):
    i = pl.program_id(0)
    k = pl.program_id(1)

    @pl.when(k == 0)
    def _():
        acc_ref[...] = jnp.zeros_like(acc_ref)

    @pl.when(k < cnts_ref[i])            # skip clamped / empty tiles
    def _():
        acc_ref[...] += jnp.dot(p_ref[...], xw_ref[...],
                                preferred_element_type=jnp.float32)

    @pl.when(k == pl.num_programs(1) - 1)
    def _():
        h_ref[...] = acc_ref[...].astype(h_ref.dtype)


# ---------------------------------------------------------------------------
# Kernel 2: block-sparse weighted-adjacency aggregation + self term + bias.
#   grid = (nc_p // tm, kmax_adj)
#   acc(tm, cout_p)  = h_self + bias                          (k == 0)
#   acc             += A(tm, tk_adj) @ h_nbr(tk_adj, cout_p)  (bf16 -> f32, guarded)
# ---------------------------------------------------------------------------
def _graph_conv_kernel(cids_ref, cnts_ref, adj_ref, hn_ref, hs_ref, b_ref, o_ref, acc_ref):
    i = pl.program_id(0)
    k = pl.program_id(1)

    @pl.when(k == 0)
    def _():
        acc_ref[...] = hs_ref[...].astype(jnp.float32) + b_ref[...]

    @pl.when(k < cnts_ref[i])            # skip clamped / empty tiles
    def _():
        acc_ref[...] += jnp.dot(adj_ref[...], hn_ref[...],
                                preferred_element_type=jnp.float32)

    @pl.when(k == pl.num_programs(1) - 1)
    def _():
        o_ref[...] = acc_ref[...].astype(o_ref.dtype)


# ---------------------------------------------------------------------------
# Wrapper: scatter edge lists into dense bf16 operators (plain-JAX glue), build
# per-row-tile nonzero-tile schedules, run the two block-sparse tiled kernels,
# slice off padding.
# ---------------------------------------------------------------------------
def conv_block2_forward(x, w_self, w_nbr, bias, edge_index, edge_attr,
                        pool_edge_index, pool_edge_attr, n_coarse,
                        *, tm=256, tk_pool=1024, tk_adj=512):
    """x: (Nf, Cin) fine-node features.  Returns (n_coarse, Cout) float32."""
    n_fine, c_in = x.shape
    c_out = w_self.shape[1]
    f32, bf16 = jnp.float32, jnp.bfloat16
    cout_p = _round_up(c_out, 128)

    # ---- tile sizes / padded dims (row and contraction dims padded independently) ----
    assert tm % 128 == 0
    tm = min(tm, max(128, _round_up(n_coarse, 128)))
    while tm > 128 and _round_up(n_coarse, 128) < 2 * tm:
        tm //= 2                     # keep >= 2 row tiles for v7x's two TensorCores
    tk_pool = _round_up(max(256, min(tk_pool, _round_up(n_fine, 256))), 256)
    tk_adj = tm * max(1, min(tk_adj // tm, pl.cdiv(n_coarse, tm)))  # multiple of tm
    nf_p = _round_up(n_fine, tk_pool)
    nc_p = _round_up(n_coarse, max(tm, tk_adj))

    # ---- plain-JAX glue: dense bf16 operators + hoisted input projection -------------
    ps, pd = pool_edge_index[0], pool_edge_index[1]           # fine src -> coarse dst
    pool_mat = (jnp.zeros((nc_p, nf_p), bf16)
                .at[pd, ps].add(pool_edge_attr.astype(bf16)))
    es, ed = edge_index[0], edge_index[1]                     # src -> dst (coarse graph)
    adj = (jnp.zeros((nc_p, nc_p), bf16)
           .at[ed, es].add(edge_attr.astype(bf16)))

    # xw = x @ [W_self | W_nbr]  (tiny; hoisted so both kernels are pure streaming matmuls)
    w_cat = jnp.zeros((c_in, 2 * cout_p), bf16)
    w_cat = w_cat.at[:, :c_out].set(w_self.astype(bf16))
    w_cat = w_cat.at[:, cout_p:cout_p + c_out].set(w_nbr.astype(bf16))
    xw = jnp.dot(x.astype(bf16), w_cat, preferred_element_type=f32).astype(bf16)
    xw_pad = jnp.zeros((nf_p, 2 * cout_p), bf16).at[:n_fine].set(xw)
    bias2d = jnp.zeros((1, cout_p), f32).at[0, :c_out].set(bias)

    # ---- block-sparse schedules (scalar-prefetched into SMEM) ------------------------
    nrt = nc_p // tm
    pool_cids, pool_cnts = _tile_schedule(pd, ps, tm, tk_pool, nrt, nf_p // tk_pool)
    adj_cids, adj_cnts = _tile_schedule(ed, es, tm, tk_adj, nrt, nc_p // tk_adj)
    kmax_pool = max(1, _static_int(jnp.max(pool_cnts), nf_p // tk_pool))
    kmax_adj = max(1, _static_int(jnp.max(adj_cnts), nc_p // tk_adj))
    pool_cids = pool_cids[:, :kmax_pool]
    adj_cids = adj_cids[:, :kmax_adj]

    cparams = pltpu.CompilerParams(
        dimension_semantics=("parallel", "arbitrary"),
        vmem_limit_bytes=_vmem_limit_bytes(),
    )

    # ---- stage 1: h = P @ xw  (columns [0:cout_p] = self, [cout_p:] = nbr) -----------
    h = pl.pallas_call(
        _pool_project_kernel,
        out_shape=jax.ShapeDtypeStruct((nc_p, 2 * cout_p), bf16),
        grid_spec=pltpu.PrefetchScalarGridSpec(
            num_scalar_prefetch=2,
            grid=(nrt, kmax_pool),
            in_specs=[
                pl.BlockSpec((tm, tk_pool),
                             lambda i, k, cids, cnts: (i, cids[i, k])),       # P tile
                pl.BlockSpec((tk_pool, 2 * cout_p),
                             lambda i, k, cids, cnts: (cids[i, k], 0)),       # xw tile
            ],
            out_specs=pl.BlockSpec((tm, 2 * cout_p),
                                   lambda i, k, cids, cnts: (i, 0)),
            scratch_shapes=[pltpu.VMEM((tm, 2 * cout_p), f32)],
        ),
        compiler_params=cparams,
    )(pool_cids, pool_cnts, pool_mat, xw_pad)

    # ---- stage 2: out = h_self + bias + A @ h_nbr -------------------------------------
    out_pad = pl.pallas_call(
        _graph_conv_kernel,
        out_shape=jax.ShapeDtypeStruct((nc_p, cout_p), f32),
        grid_spec=pltpu.PrefetchScalarGridSpec(
            num_scalar_prefetch=2,
            grid=(nrt, kmax_adj),
            in_specs=[
                pl.BlockSpec((tm, tk_adj),
                             lambda i, k, cids, cnts: (i, cids[i, k])),       # A tile
                pl.BlockSpec((tk_adj, cout_p),
                             lambda i, k, cids, cnts: (cids[i, k], 1)),       # h_nbr (col blk 1)
                pl.BlockSpec((tm, cout_p),
                             lambda i, k, cids, cnts: (i, 0)),                # h_self (col blk 0)
                pl.BlockSpec((1, cout_p),
                             lambda i, k, cids, cnts: (0, 0)),                # bias (resident)
            ],
            out_specs=pl.BlockSpec((tm, cout_p),
                                   lambda i, k, cids, cnts: (i, 0)),
            scratch_shapes=[pltpu.VMEM((tm, cout_p), f32)],
        ),
        compiler_params=cparams,
    )(adj_cids, adj_cnts, adj, h, h, bias2d)

    return out_pad[:n_coarse, :c_out]


# ---------------------------------------------------------------------------
# Pure-JAX reference with the same bf16 rounding points, for correctness.
# ---------------------------------------------------------------------------
def _reference(x, w_self, w_nbr, bias, edge_index, edge_attr,
               pool_edge_index, pool_edge_attr, n_coarse):
    f32, bf16 = jnp.float32, jnp.bfloat16
    n_fine = x.shape[0]
    ps, pd = pool_edge_index[0], pool_edge_index[1]
    pool_mat = (jnp.zeros((n_coarse, n_fine), bf16)
                .at[pd, ps].add(pool_edge_attr.astype(bf16)))
    es, ed = edge_index[0], edge_index[1]
    adj = jnp.zeros((n_coarse, n_coarse), bf16).at[ed, es].add(edge_attr.astype(bf16))

    x_b = x.astype(bf16)
    xw_s = jnp.dot(x_b, w_self.astype(bf16), preferred_element_type=f32).astype(bf16)
    xw_n = jnp.dot(x_b, w_nbr.astype(bf16), preferred_element_type=f32).astype(bf16)
    h_s = jnp.dot(pool_mat, xw_s, preferred_element_type=f32).astype(bf16)
    h_n = jnp.dot(pool_mat, xw_n, preferred_element_type=f32).astype(bf16)
    return h_s.astype(f32) + bias[None, :] + jnp.dot(adj, h_n, preferred_element_type=f32)


if __name__ == "__main__":
    key = jax.random.PRNGKey(0)
    (k_x, k_ws, k_wn, k_b, k_es, k_ed, k_ea, k_ps, k_pd, k_pa) = jax.random.split(key, 10)

    in_channels, out_channels = 8, 32
    n_fine, n_coarse = 4096, 1024

    # deterministic synthetic parameters (no checkpoint load)
    w_self = (jax.random.normal(k_ws, (in_channels, out_channels), jnp.float32)
              / jnp.sqrt(in_channels))
    w_nbr = (jax.random.normal(k_wn, (in_channels, out_channels), jnp.float32)
             / jnp.sqrt(in_channels))
    bias = jax.random.normal(k_b, (out_channels,), jnp.float32) * 0.1
    x = jax.random.normal(k_x, (n_fine, in_channels), jnp.float32)

    # pooling edges: each fine node -> its parent coarse node (local), plus a handful
    # of long-range edges hitting only the first coarse row-tile (varies per-tile nnz,
    # so the block-sparse skip/clamp path is exercised).
    p_src_loc = jnp.arange(n_fine, dtype=jnp.int32)
    p_dst_loc = p_src_loc // (n_fine // n_coarse)
    p_src_x = jax.random.randint(k_ps, (64,), 0, n_fine, jnp.int32)
    p_dst_x = jax.random.randint(k_pd, (64,), 0, 256, jnp.int32)
    pool_edge_index = jnp.stack([jnp.concatenate([p_src_loc, p_src_x]),
                                 jnp.concatenate([p_dst_loc, p_dst_x])])
    pool_edge_attr = jax.random.uniform(k_pa, (pool_edge_index.shape[1],), jnp.float32)

    # coarse point-point edges: banded (i <-> i+1) plus a few extras in the first tile
    # (row 0 = src, row 1 = dst).
    i0 = jnp.arange(n_coarse - 1, dtype=jnp.int32)
    e_src_x = jax.random.randint(k_es, (64,), 0, 256, jnp.int32)
    e_dst_x = jax.random.randint(k_ed, (64,), 0, 256, jnp.int32)
    edge_index = jnp.stack([jnp.concatenate([i0, i0 + 1, e_src_x]),
                            jnp.concatenate([i0 + 1, i0, e_dst_x])])
    edge_attr = jax.random.uniform(k_ea, (edge_index.shape[1],), jnp.float32)
    # TODO(synk): exact CustomPoolingAdd / poolDataForward semantics (e.g. weight
    # normalization) are not available; weighted-sum ('add') pooling is implemented.

    out = conv_block2_forward(x, w_self, w_nbr, bias, edge_index, edge_attr,
                              pool_edge_index, pool_edge_attr, n_coarse)
    out = jax.block_until_ready(out)

    ref = _reference(x, w_self, w_nbr, bias, edge_index, edge_attr,
                     pool_edge_index, pool_edge_attr, n_coarse)
    assert out.shape == (n_coarse, out_channels)
    err = float(jnp.max(jnp.abs(out - ref)))
    scale = float(jnp.max(jnp.abs(ref)))
    assert err <= 1e-2 * max(scale, 1.0), (err, scale)

    print("KERNEL_OK")
</pallas_src>

<mosaic_0001>
module attributes {stable_mosaic.version = 11 : i64} {
  func.func @_pool_project_kernel(%arg0: i32, %arg1: i32, %arg2: memref<4x4xi32, #tpu.memory_space<smem>>, %arg3: memref<4xi32, #tpu.memory_space<smem>>, %arg4: memref<256x1024xbf16, #tpu.memory_space<vmem>>, %arg5: memref<1024x256xbf16, #tpu.memory_space<vmem>>, %arg6: memref<256x256xbf16, #tpu.memory_space<vmem>>, %arg7: memref<256x256xf32, #tpu.memory_space<vmem>>) attributes {dimension_semantics = [#tpu.dimension_semantics<parallel>, #tpu.dimension_semantics<arbitrary>], iteration_bounds = array<i64: 4, 4>, scalar_prefetch = 2 : i64, scratch_operands = 1 : i64, tpu.core_type = #tpu.core_type<tc>, window_params = [{transform_indices = @transform_0, window_bounds = array<i64: 256, 1024>}, {transform_indices = @transform_1, window_bounds = array<i64: 1024, 256>}, {transform_indices = @transform_2, window_bounds = array<i64: 256, 256>}]} {
    %c0_i32 = arith.constant 0 : i32
    %0 = arith.cmpi eq, %arg1, %c0_i32 : i32
    %1 = arith.extui %0 : i1 to i32
    %c0_i32_0 = arith.constant 0 : i32
    %2 = arith.cmpi ne, %1, %c0_i32_0 : i32
    scf.if %2 {
      %cst = arith.constant 0.000000e+00 : f32
      %11 = vector.broadcast %cst : f32 to vector<256x256xf32>
      %c0 = arith.constant 0 : index
      %c0_3 = arith.constant 0 : index
      %12 = vector.load %arg7[%c0, %c0_3] : memref<256x256xf32, #tpu.memory_space<vmem>>, vector<256x256xf32>
      tpu.vector_store %arg7[%c0, %c0_3], %11 {strides = array<i32>} : memref<256x256xf32, #tpu.memory_space<vmem>>, vector<256x256xf32>,
    } else {
    }
    %3 = arith.index_cast %arg0 : i32 to index
    %4 = memref.load %arg3[%3] : memref<4xi32, #tpu.memory_space<smem>>
    %5 = arith.cmpi slt, %arg1, %4 : i32
    %6 = arith.extui %5 : i1 to i32
    %c0_i32_1 = arith.constant 0 : i32
    %7 = arith.cmpi ne, %6, %c0_i32_1 : i32
    scf.if %7 {
      %c0 = arith.constant 0 : index
      %c0_3 = arith.constant 0 : index
      %11 = vector.load %arg7[%c0, %c0_3] : memref<256x256xf32, #tpu.memory_space<vmem>>, vector<256x256xf32>
      %c0_4 = arith.constant 0 : index
      %c0_5 = arith.constant 0 : index
      %12 = vector.load %arg4[%c0_4, %c0_5] : memref<256x1024xbf16, #tpu.memory_space<vmem>>, vector<256x1024xbf16>
      %c0_6 = arith.constant 0 : index
      %c0_7 = arith.constant 0 : index
      %13 = vector.load %arg5[%c0_6, %c0_7] : memref<1024x256xbf16, #tpu.memory_space<vmem>>, vector<1024x256xbf16>
      %cst = arith.constant dense<0.000000e+00> : vector<256x256xf32>
      %14 = tpu.matmul %12, %13, %cst {dimension_numbers = #tpu.dot_dimension_numbers<[1], [0], [0], [1], [0, 0, 1, 1], [], []>} : vector<256x1024xbf16>, vector<1024x256xbf16>, vector<256x256xf32> -> vector<256x256xf32>
      %15 = arith.addf %11, %14 : vector<256x256xf32>
      %c0_8 = arith.constant 0 : index
      %c0_9 = arith.constant 0 : index
      %16 = vector.load %arg7[%c0_8, %c0_9] : memref<256x256xf32, #tpu.memory_space<vmem>>, vector<256x256xf32>
      tpu.vector_store %arg7[%c0_8, %c0_9], %15 {strides = array<i32>} : memref<256x256xf32, #tpu.memory_space<vmem>>, vector<256x256xf32>,
    } else {
    }
    %c3_i32 = arith.constant 3 : i32
    %8 = arith.cmpi eq, %arg1, %c3_i32 : i32
    %9 = arith.extui %8 : i1 to i32
    %c0_i32_2 = arith.constant 0 : i32
    %10 = arith.cmpi ne, %9, %c0_i32_2 : i32
    scf.if %10 {
      %c0 = arith.constant 0 : index
      %c0_3 = arith.constant 0 : index
      %11 = vector.load %arg7[%c0, %c0_3] : memref<256x256xf32, #tpu.memory_space<vmem>>, vector<256x256xf32>
      %12 = arith.truncf %11 : vector<256x256xf32> to vector<256x256xbf16>
      %c0_4 = arith.constant 0 : index
      %c0_5 = arith.constant 0 : index
      %13 = vector.load %arg6[%c0_4, %c0_5] : memref<256x256xbf16, #tpu.memory_space<vmem>>, vector<256x256xbf16>
      tpu.vector_store %arg6[%c0_4, %c0_5], %12 {strides = array<i32>} : memref<256x256xbf16, #tpu.memory_space<vmem>>, vector<256x256xbf16>,
    } else {
    }
    return
  }
  func.func @transform_0(%arg0: i32, %arg1: i32, %arg2: memref<4x4xi32, #tpu.memory_space<smem>>, %arg3: memref<4xi32, #tpu.memory_space<smem>>) -> (i32, i32) {
    %0 = arith.index_cast %arg0 : i32 to index
    %1 = arith.index_cast %arg1 : i32 to index
    %2 = memref.load %arg2[%0, %1] : memref<4x4xi32, #tpu.memory_space<smem>>
    %c0_i32 = arith.constant 0 : i32
    return %arg0, %2 : i32, i32
  }
  func.func @transform_1(%arg0: i32, %arg1: i32, %arg2: memref<4x4xi32, #tpu.memory_space<smem>>, %arg3: memref<4xi32, #tpu.memory_space<smem>>) -> (i32, i32) {
    %0 = arith.index_cast %arg0 : i32 to index
    %1 = arith.index_cast %arg1 : i32 to index
    %2 = memref.load %arg2[%0, %1] : memref<4x4xi32, #tpu.memory_space<smem>>
    %c0_i32 = arith.constant 0 : i32
    %c0_i32_0 = arith.constant 0 : i32
    return %2, %c0_i32 : i32, i32
  }
  func.func @transform_2(%arg0: i32, %arg1: i32, %arg2: memref<4x4xi32, #tpu.memory_space<smem>>, %arg3: memref<4xi32, #tpu.memory_space<smem>>) -> (i32, i32) {
    %c0_i32 = arith.constant 0 : i32
    %c0_i32_0 = arith.constant 0 : i32
    return %arg0, %c0_i32 : i32, i32
  }
}

</mosaic_0001>

<bundles_post_ra>
// kernel: tpu_custom_call.1
= control target key start
LH: loop header
LB: loop body
LE: loop exit
PB: predicated region body
PF: predicated region fallthrough
CT: control target
= control target key end

     0   :  { %s5216_s0 = inlined_call_operand.hbm [shape: s32[4,4], index: 0, kind: input, shape index: {}]   ;;  %s5217_s2 = inlined_call_operand.hbm [shape: bf16[1024,4096], index: 2, kind: input, shape index: {}]   ;;  %s5218_s3 = inlined_call_operand.hbm [shape: bf16[4096,256], index: 3, kind: input, shape index: {}]   ;;  %s5219_s4 = inlined_call_operand.hbm [shape: bf16[1024,256], index: 4, kind: output, shape index: {}]   ;;  %s5220_s1 = inlined_call_operand.hbm [shape: s32[4], index: 1, kind: input, shape index: {}]  }
   0x1   :  { %5232 = sst [smem:[#allocation26_spill]] %s5217_s2  ;;  %s4176_s17 = scalar_lea.hbm %s5216_s0, 64 }
   0x2   :  { %5233 = sst [smem:[#allocation27_spill]] %s5218_s3  ;;  %p4177_p0 = scmp.ne.s32.totalorder %s5216_s0, %s4176_s17 }
   0x3   :  { %5234 = sst [smem:[#allocation28_spill]] %s5219_s4  ;;  %p4180_p1 = scmp.lt.u32.totalorder %s4176_s17, %s5216_s0 }
   0x5   :  { %p4182_p2 = pnand %p4180_p1, %p4177_p0 }
   0x7   :  { %4185 = shalt.err (!%p4182_p2)  }
   0x8   :  { %s4410_s22 = smov [#allocation4]   ;;  %s4186_s27 = scalar_lea.hbm %s5220_s1, 16 }
   0x9   :  { %10 = dma.hbm_to_smem %s5216_s0, 64, %s4410_s22, [#allocation3] }
   0xa   :  { %p4187_p3 = scmp.ne.s32.totalorder %s5220_s1, %s4186_s27  ;;  %p4190_p4 = scmp.lt.u32.totalorder %s4186_s27, %s5220_s1 }
   0xc   :  { %p4192_p5 = pnand %p4190_p4, %p4187_p3 }
   0xe   :  { %4195 = shalt.err (!%p4192_p5)  }
   0xf   :  { %s4411_s6 = smov [#allocation5]  }
  0x10   :  { %12 = dma.hbm_to_smem %s5220_s1, 16, %s4411_s6, [#allocation3] }
  0x11   :  { %4340 = dma.done.wait [#allocation3], 80 }
  0x12   :  { %4341 = vsyncadd [#allocation3], 4294967216 }
  0x13   :  { %14 = sfence }
  0x14   :  { %15 = vsyncpa [#allocation7], 0 }
  0x15   :  { %17 = vsyncpa [#allocation7 + $0x1], 0 }
  0x16   :  { %18 = vsyncpa [#allocation10], 0 }
  0x17   :  { %20 = vsyncpa [#allocation10 + $0x1], 0 }
  0x18   :  { %21 = vsyncpa [#allocation8], 0 }
  0x19   :  { %23 = vsyncpa [#allocation8 + $0x1], 0  ;;  %s4472_s0 = smov 0   ;;  %s4474_s9 = smov 0  }
  0x1a   :  { %s4476_s10 = smov 0   ;;  %s4478_s11 = smov 0  }
  0x1b   :  { %s4480_s12 = smov 0   ;;  %s4482_s1 = smov 0  }
  0x1c   :  { %s4484_s13 = smov 0   ;;  %s4486_s14 = smov 0  }
  0x1d   :  { %s4488_s15 = smov 0   ;;  %s4490_s16 = smov 0  }
  0x1e   :  { %s4492_s17 = smov 0   ;;  %s4494_s18 = smov 0  }
  0x1f   :  { %s4496_s19 = smov 0   ;;  %s4498_s20 = smov 0  }
  0x20 LB: > { %5235 = sst [smem:[#allocation20_spill]] %s4392_s16  ;;  %s38_s21 = sadd.s32 1, %s4400_s18  ;;  %s4408_s20 = sphi %s4498_s20, %s29_s20   ;;  %s4404_s19 = sphi %s4496_s19, %s5272_s19   ;;  %s4400_s18 = sphi %s4494_s18, %s5271_s18   ;;  %s4396_s17 = sphi %s4492_s17, %s5270_s17   ;;  %s4392_s16 = sphi %s4490_s16, %s5269_s16   ;;  %s4388_s15 = sphi %s4488_s15, %s5281_s15   ;;  %s4384_s14 = sphi %s4486_s14, %s5280_s14   ;;  %s4380_s13 = sphi %s4484_s13, %s5279_s13   ;;  %s4376_s1 = sphi %s4482_s1, %s5278_s1   ;;  %s4372_s12 = sphi %s4480_s12, %s5277_s12   ;;  %s4368_s11 = sphi %s4478_s11, %s5276_s11   ;;  %s4364_s10 = sphi %s4476_s10, %s5275_s10   ;;  %s4360_s9 = sphi %s4474_s9, %s5274_s9   ;;  %s4356_s0 = sphi %s4472_s0, %s5273_s0  }
  0x21   : > { %5236 = sst [smem:[#allocation21_spill]] %s4396_s17  ;;  %s41_s22 = sadd.s32 1, %s4404_s19 }
  0x22   : > { %5237 = sst [smem:[#allocation22_spill]] %s4400_s18  ;;  %p39_p6 = scmp.ge.s32.totalorder %s38_s21, 4 }
  0x23   : > { %5238 = sst [smem:[#allocation23_spill]] %s4404_s19  ;;  %s45_s23 = sshra.s32 %s4400_s18, 7 }
  0x24   : > { %s47_s24 = sadd.s32 %s4404_s19, %s45_s23  ;;  %s50_s25 = sand.u32 127, %s4400_s18 }
  0x25   : > { %s5283_s21 = smov (%p39_p6, %s38_s21), 0  ;;  %s5285_s22 = smov (!%p39_p6, %s41_s22), %s4404_s19 }
  0x26   : > { %5239 = sst [smem:[#allocation24_spill]] %s5283_s21  ;;  %s3288_s26 = sshll.u32 %s47_s24, 7 }
  0x27   : > { %s53_s27 = sshra.s32 %s5283_s21, 7  ;;  %p43_p7 = scmp.ge.s32.totalorder %s5285_s22, 4 }
  0x28   : > { %s4551_s28 = sadd.s32 %s3288_s26, %s50_s25  ;;  %s58_s30 = sand.u32 127, %s5283_s21 }
  0x29   : > { %s52_s29 = sld [smem:[#allocation4 + %s4551_s28]]  ;;  %s5287_s22 = smov (%p43_p7, %s5285_s22), 0 }
  0x2a   : > { %5240 = sst [smem:[#allocation25_spill]] %s5287_s22  ;;  %s66_s5 = sadd.s32 1, %s4388_s15 }
  0x2b   : > { %p73_p8 = scmp.ne.s32.totalorder %s4388_s15, %s4384_s14  ;;  %s55_s6 = sadd.s32 %s53_s27, %s5287_s22 }
  0x2c   : > { %s61_s7 = ssub.s32 %s4404_s19, %s5287_s22  ;;  %s3289_s8 = sshll.u32 %s55_s6, 7 }
  0x2d   : > { %p5228_p9 = scmp.eq.s32.totalorder %s4408_s20, 0  ;;  %s4564_s23 = sadd.s32 %s3289_s8, %s58_s30 }
  0x2e   : > { %s60_s24 = sld [smem:[#allocation4 + %s4564_s23]]  ;;  %p132_p12 = scmp.eq.s32.totalorder %s61_s7, 0 }
  0x2f   : > { %p4571_p11 = por %p5228_p9, %p73_p8  ;;  %s4576_s26 = sld [smem:[#allocation4 + %s4551_s28]] }
  0x30   : > { %s134_s27 = sadd.s32 1, %s4364_s10  ;;  %p5227_p13 = scmp.lt.s32.totalorder %s4408_s20, 16 }
  0x31   : > { %s4580_s30 = scalar_select %p132_p12, %s4364_s10, %s134_s27  }
  0x32   : > { %s171_s6 = sand.u32 1, %s4388_s15   ;;  %s3606_s18 = sshll.u32 %s4404_s19, 10 }
  0x33   : > { %s3294_s8 = sshll.u32 %s171_s6, 10  ;;  %p4603_p1 = pnand %p5227_p13, %p4571_p11 }
  0x34   : > { %s62_s22 = ssub.s32 %s52_s29, %s60_s24  ;;  %s175_s4 = scalar_lea.vmem [#allocation6], %s3294_s8 }
  0x35   : > { %s63_s21 = sor.u32 %s62_s22, %s61_s7  ;;  %s193_s17 = sshll.u32 %s175_s4, 4  ;;  %s4597_s17 = int_to_ptr.vmem [resolvable:$true] %s193_s17 }
  0x36   : > { %p64_p0 = scmp.eq.s32.totalorder %s63_s21, 0  ;;  %p3305_p2 = scmp.ge.s32.totalorder %s4408_s20, 1 }
  0x37   : > { %s3835_s16 = scalar_select %p4571_p11, [#allocation4], [#allocation12] }
  0x38   : > { %s4588_s3 = scalar_select %p64_p0, %s4388_s15, %s66_s5  }
  0x39   : > { %s3836_s27 = scalar_select %p4571_p11, %s4551_s28, 0 }
  0x3a   : > { %s5289_s16 = smov (!%p5227_p13, %s3835_s16), [#allocation14]  ;;  %p231_p3 = scmp.lt.s32.totalorder %s4408_s20, 17 }
  0x3b   : > { %s5291_s27 = smov (!%p5227_p13, %s3836_s27), 0  ;;  %s5244_s2 = sld [smem:[#allocation26_spill]] }
  0x3c   : > { %s183_s4 = sld [smem:[%s5289_s16 + %s5291_s27]]  ;;  %p4609_p4 = pnand %p3305_p2, %p231_p3 }
  0x3d   : > { %s4618_s19 = scalar_lea.sflag [#allocation7], %s171_s6  ;;  %p4198_p6 = pneg %p4603_p1 }
  0x42   : > { %s3297_s29 = sshll.u32 %s183_s4, 3  ;;  %s4201_s4 = scalar_lea.hbm %s5244_s2, 262144 }
  0x43   : > { %s190_s5 = sadd.s32 %s3606_s18, %s3297_s29 }
  0x44   : > { %s3299_s7 = sshll.u32 %s190_s5, 6 }
  0x45   : > { %s4616_s25 = scalar_lea.hbm %s5244_s2, %s3299_s7 }
  0x46   : > { %s4196_s16 = scalar_lea.hbm %s4616_s25, 16384  ;;  %p4202_p11 = scmp.lt.u32.totalorder %s4616_s25, %s5244_s2 }
  0x47   : > { %p4197_p5 = scmp.ne.s32.totalorder %s4616_s25, %s4196_s16  ;;  %p4203_p12 = scmp.lt.u32.totalorder %s4201_s4, %s4196_s16 }
  0x48   : > { %p4205_p2 = scmp.lt.u32.totalorder %s4196_s16, %s4616_s25 }
  0x49   : > { %p4199_p7 = pnand %p4198_p6, %p4197_p5  ;;  %p4204_p0 = por %p4203_p12, %p4202_p11 }
  0x4b   : > { %p4200_p8 = pneg %p4199_p7  ;;  %p4206_p3 = por %p4205_p2, %p4204_p0 }
  0x4d   : > { %p4207_p13 = pnand %p4206_p3, %p4200_p8 }
  0x4f   : > { %4210 = shalt.err (!%p4207_p13)
}
  0x50   : > { %s4211_s6 = scalar_lea.vmem %s4597_s17, 16384  ;;  %s4412_s7 = smov [#allocation6]  }
  0x51   : > { %p4212_p5 = scmp.ne.s32.totalorder %s4597_s17, %s4211_s6  ;;  %s4216_s24 = sshll.u32 %s4412_s7, 4  ;;  %s4217_s24 = int_to_ptr.vmem [resolvable:$false] %s4216_s24 }
  0x52   : > { %s4218_s8 = scalar_lea.vmem %s4217_s24, 32768  ;;  %p4219_p10 = scmp.lt.s32.totalorder %s4597_s17, %s4217_s24 }
  0x53   : > { %p4214_p7 = pnand %p4212_p5, %p4198_p6  ;;  %p4220_p11 = scmp.lt.s32.totalorder %s4218_s8, %s4211_s6 }
  0x55   : > { %p4215_p9 = pneg %p4214_p7  ;;  %p4221_p12 = por %p4220_p11, %p4219_p10 }
  0x57   : > { %p4222_p0 = pnand %p4221_p12, %p4215_p9 }
  0x59   : > { %4225 = shalt.err (!%p4222_p0)
}
  0x5a   : > { %s4413_s16 = smov 2048   ;;  %s4414_s18 = smov 512  }
  0x5b   : > { %s4415_s27 = smov 32   ;;  %s3286_s4 = sadd.s32 4294967295, %s4408_s20  }
  0x5c   : > { %3850 = dma.hbm_to_vmem [thread:$0]  (!%p4603_p1), %s4616_s25, 16384, %s4597_s17, %s4618_s19, %s4413_s16, %s4414_s18, %s4415_s27  }
  0x5d   : > { %s3287_s29 = sadd.s32 4294967294, %s4408_s20   ;;  %p80_p9 = scmp.eq.s32.totalorder %s3286_s4, 0 }
  0x5e   : > { %s104_s5 = sld [smem:[#allocation4 + %s4564_s23]]  ;;  %s108_s6 = sadd.s32 1, %s4376_s1 }
  0x5f   : > { %p115_p10 = scmp.ne.s32.totalorder %s4376_s1, %s4372_s12  ;;  %p5245_p13 = scmp.ne.s32.totalorder %s4384_s14, %s4380_s13 }
  0x60   : > { %p121_p8 = scmp.ne.s32.totalorder %s4372_s12, %s4368_s11  ;;  %p5247_p2 = scmp.eq.s32.totalorder %s4408_s20, 0 }
  0x61   : > { %p4655_p6 = por %p80_p9, %p5245_p13  ;;  %p144_p1 = scmp.ne.s32.totalorder %s4364_s10, %s4360_s9 }
  0x62   : > { %p4663_p3 = por %p115_p10, %p5247_p2  ;;  %p4669_p5 = por %p121_p8, %p80_p9 }
  0x63   : > { %s5246_s7 = scalar_select %p4655_p6, 1, 0 }
  0x64   : > { %s5249_s17 = scalar_select %p4669_p5, 1, 0 }
  0x65   : > { %p145_p7 = scmp.eq.s32.totalorder %s3286_s4, 15  ;;  %p150_p11 = scmp.ne.s32.totalorder %s4360_s9, %s4356_s0 }
  0x66   : > { %p151_p12 = scmp.eq.s32.totalorder %s3287_s29, 15  ;;  %s105_s11 = ssub.s32 %s4576_s26, %s104_s5 }
  0x67   : > { %p4676_p0 = por %p145_p7, %p144_p1  ;;  %p106_p10 = scmp.eq.s32.totalorder %s105_s11, 0 }
  0x68   : > { %p4680_p13 = por %p151_p12, %p150_p11  ;;  %s203_s23 = sand.u32 1, %s4376_s1  }
  0x69   : > { %s5250_s13 = scalar_select %p4676_p0, 1, 0 }
  0x6a   : > { %s5251_s19 = scalar_select %p4680_p13, 1, 0 }
  0x6b   : > { %p5252_p2 = scmp.lt.s32.totalorder %s4408_s20, 16  ;;  %s3300_s26 = sshll.u32 %s203_s23, 10 }
  0x6c   : > { %s4694_s24 = scalar_select %p106_p10, %s4376_s1, %s108_s6  }
  0x6d   : > { %p4689_p9 = pnand %p5252_p2, %p4663_p3  ;;  %s5293_s28 = smov (!%p4663_p3, %s4551_s28), 0 }
  0x6e   : > { %s3838_s8 = scalar_select %p4663_p3, [#allocation4], [#allocation13] }
  0x6f   : > { %p5254_p8 = pmov %p5252_p2  ;;  %p5255_p1 = pmov %p5252_p2 }
  0x70   : > { %s207_s18 = scalar_lea.vmem [#allocation9], %s3300_s26  ;;  %s5256_s6 = sld [smem:[#allocation27_spill]] }
  0x71   : > { %s5295_s8 = smov (!%p5254_p8, %s3838_s8), [#allocation15]  ;;  %s5297_s28 = smov (!%p5255_p1, %s5293_s28), 0 }
  0x72   : > { %s215_s16 = sld [smem:[%s5295_s8 + %s5297_s28]]  ;;  %s223_s27 = sshll.u32 %s207_s18, 4  ;;  %s4705_s27 = int_to_ptr.vmem [resolvable:$true] %s223_s27 }
  0x73   : > { %s4712_s22 = scalar_lea.sflag [#allocation10], %s203_s23  ;;  %p4228_p7 = pneg %p4689_p9 }
  0x76   : > { %s4231_s8 = scalar_lea.hbm %s5256_s6, 65536 }
  0x78   : > { %s3608_s4 = sshll.u32 %s215_s16, 14 }
  0x79   : > { %s4710_s11 = scalar_lea.hbm %s5256_s6, %s3608_s4 }
  0x7a   : > { %s4226_s2 = scalar_lea.hbm %s4710_s11, 16384  ;;  %p4232_p10 = scmp.lt.u32.totalorder %s4710_s11, %s5256_s6 }
  0x7b   : > { %p4227_p3 = scmp.ne.s32.totalorder %s4710_s11, %s4226_s2  ;;  %p4233_p2 = scmp.lt.u32.totalorder %s4231_s8, %s4226_s2 }
  0x7c   : > { %p4235_p1 = scmp.lt.u32.totalorder %s4226_s2, %s4710_s11 }
  0x7d   : > { %p4229_p11 = pnand %p4228_p7, %p4227_p3  ;;  %p4234_p8 = por %p4233_p2, %p4232_p10 }
  0x7f   : > { %p4230_p12 = pneg %p4229_p11  ;;  %p4236_p13 = por %p4235_p1, %p4234_p8 }
  0x81   : > { %p4237_p0 = pnand %p4236_p13, %p4230_p12 }
  0x83   : > { %4240 = shalt.err (!%p4237_p0)
}
  0x84   : > { %s4241_s23 = scalar_lea.vmem %s4705_s27, 16384  ;;  %s4416_s4 = smov [#allocation9]  }
  0x85   : > { %p4242_p3 = scmp.ne.s32.totalorder %s4705_s27, %s4241_s23  ;;  %s4246_s29 = sshll.u32 %s4416_s4, 4  ;;  %s4247_s29 = int_to_ptr.vmem [resolvable:$false] %s4246_s29 }
  0x86   : > { %s4248_s5 = scalar_lea.vmem %s4247_s29, 32768  ;;  %p4249_p6 = scmp.lt.s32.totalorder %s4705_s27, %s4247_s29 }
  0x87   : > { %p4244_p11 = pnand %p4242_p3, %p4228_p7  ;;  %p4250_p10 = scmp.lt.s32.totalorder %s4248_s5, %s4241_s23 }
  0x89   : > { %p4245_p5 = pneg %p4244_p11  ;;  %p4251_p2 = por %p4250_p10, %p4249_p6 }
  0x8b   : > { %p4252_p8 = pnand %p4251_p2, %p4245_p5 }
  0x8d   : > { %4255 = shalt.err (!%p4252_p8)
}
  0x8e   : > { %s4417_s2 = smov 128   ;;  %s4418_s28 = smov 8  }
  0x8f   : > { %3855 = dma.hbm_to_vmem [thread:$0]  (!%p4689_p9), %s4710_s11, 16384, %s4705_s27, %s4712_s22, %s4417_s2, %s4417_s2, %s4418_s28  }
  0x90   : > { %235 = sbr.rel (%p4609_p4) target bundleno = 805 (0x325), region = 28  ;;  %s237_s26 = sand.u32 (!%p4609_p4), 1, %s4384_s14  }
  0x91   : > { %s3306_s8 = sshll.u32 (!%p4609_p4), %s237_s26, 10  ;;  %s238_s16 = scalar_lea.sflag (!%p4609_p4), [#allocation7], %s237_s26 }
  0x92   : > { %s4743_s18 = scalar_lea.vmem (!%p4609_p4), [#allocation6], %s3306_s8  ;;  %p5257_p6 = scmp.ne.s32.totalorder (!%p4609_p4), %s5246_s7, 0 }
  0x97   : > { %4343 = dma.done.wait (%p5257_p6), %s238_s16, 16384  }
  0x98   : > { %4345 = vsyncadd (%p5257_p6), %s238_s16, 4294950912  ;;  %s246_s23 = sand.u32 1, %s4372_s12   ;;  %p5258_p4 = scmp.ne.s32.totalorder %s5249_s17, 0 }
  0x99   : > { %s3307_s25 = sshll.u32 %s246_s23, 10  ;;  %s247_s27 = scalar_lea.sflag [#allocation10], %s246_s23 }
  0x9a   : > { %s4750_s11 = scalar_lea.vmem [#allocation9], %s3307_s25 }
  0x9b   : > { %4347 = dma.done.wait (%p5258_p4), %s247_s27, 16384  }
  0x9c   : > { %4349 = vsyncadd (%p5258_p4), %s247_s27, 4294950912  ;;  %s273_s21 = sand.u32 1, %s4360_s9   ;;  %s5259_s7 = sld [smem:[#allocation20_spill]] }
  0x9d   : > { %s3308_s22 = sshll.u32 %s273_s21, 8 }
  0x9e   : > { %s4759_s4 = scalar_lea.vmem [#allocation11], %s3308_s22 }
  0xa2   : > { %p3309_p5 = scmp.ne.s32.totalorder %s5259_s7, 0 }
  0xa3   : > { %v4419_v0 = vmov (!%p3309_p5), 0.0  }
  0xa4   : > { %299 = sbr.rel (%p3309_p5) target bundleno = 196 (0xc4), region = 40  ;;  %300 = vst [vmem:[#allocation2] sm:$0xff] (!%p3309_p5), %v4419_v0  ;;  %301 = vst [vmem:[#allocation2 + $0x8] sm:$0xff] (!%p3309_p5), %v4419_v0 }
  0xa5   : > { %302 = vst [vmem:[#allocation2 + $0x10] sm:$0xff] (!%p3309_p5), %v4419_v0  ;;  %303 = vst [vmem:[#allocation2 + $0x18] sm:$0xff] (!%p3309_p5), %v4419_v0 }
  0xa6   : > { %304 = vst [vmem:[#allocation2 + $0x20] sm:$0xff] (!%p3309_p5), %v4419_v0  ;;  %305 = vst [vmem:[#allocation2 + $0x28] sm:$0xff] (!%p3309_p5), %v4419_v0 }
  0xa7   : > { %306 = vst [vmem:[#allocation2 + $0x30] sm:$0xff] (!%p3309_p5), %v4419_v0  ;;  %307 = vst [vmem:[#allocation2 + $0x38] sm:$0xff] (!%p3309_p5), %v4419_v0 }
  0xa8   : > { %308 = vst [vmem:[#allocation2 + $0x40] sm:$0xff] (!%p3309_p5), %v4419_v0  ;;  %309 = vst [vmem:[#allocation2 + $0x48] sm:$0xff] (!%p3309_p5), %v4419_v0 }
  0xa9   : > { %310 = vst [vmem:[#allocation2 + $0x50] sm:$0xff] (!%p3309_p5), %v4419_v0  ;;  %311 = vst [vmem:[#allocation2 + $0x58] sm:$0xff] (!%p3309_p5), %v4419_v0 }
  0xaa   : > { %312 = vst [vmem:[#allocation2 + $0x60] sm:$0xff] (!%p3309_p5), %v4419_v0  ;;  %313 = vst [vmem:[#allocation2 + $0x68] sm:$0xff] (!%p3309_p5), %v4419_v0 }
  0xab   : > { %314 = vst [vmem:[#allocation2 + $0x70] sm:$0xff] %v4419_v0  ;;  %315 = vst [vmem:[#allocation2 + $0x78] sm:$0xff] %v4419_v0 }
  0xac   : > { %316 = vst [vmem:[#allocation2 + $0x80] sm:$0xff] %v4419_v0  ;;  %317 = vst [vmem:[#allocation2 + $0x88] sm:$0xff] %v4419_v0 }
  0xad   : > { %318 = vst [vmem:[#allocation2 + $0x90] sm:$0xff] %v4419_v0  ;;  %319 = vst [vmem:[#allocation2 + $0x98] sm:$0xff] %v4419_v0 }
  0xae   : > { %320 = vst [vmem:[#allocation2 + $0xa0] sm:$0xff] %v4419_v0  ;;  %321 = vst [vmem:[#allocation2 + $0xa8] sm:$0xff] %v4419_v0 }
  0xaf   : > { %322 = vst [vmem:[#allocation2 + $0xb0] sm:$0xff] %v4419_v0  ;;  %323 = vst [vmem:[#allocation2 + $0xb8] sm:$0xff] %v4419_v0 }
  0xb0   : > { %324 = vst [vmem:[#allocation2 + $0xc0] sm:$0xff] %v4419_v0  ;;  %325 = vst [vmem:[#allocation2 + $0xc8] sm:$0xff] %v4419_v0 }
  0xb1   : > { %326 = vst [vmem:[#allocation2 + $0xd0] sm:$0xff] %v4419_v0  ;;  %327 = vst [vmem:[#allocation2 + $0xd8] sm:$0xff] %v4419_v0 }
  0xb2   : > { %328 = vst [vmem:[#allocation2 + $0xe0] sm:$0xff] %v4419_v0  ;;  %329 = vst [vmem:[#allocation2 + $0xe8] sm:$0xff] %v4419_v0 }
  0xb3   : > { %330 = vst [vmem:[#allocation2 + $0xf0] sm:$0xff] %v4419_v0  ;;  %331 = vst [vmem:[#allocation2 + $0xf8] sm:$0xff] %v4419_v0 }
  0xb4   : > { %332 = vst [vmem:[#allocation2 + $0x100] sm:$0xff] %v4419_v0  ;;  %333 = vst [vmem:[#allocation2 + $0x108] sm:$0xff] %v4419_v0 }
  0xb5   : > { %334 = vst [vmem:[#allocation2 + $0x110] sm:$0xff] %v4419_v0  ;;  %335 = vst [vmem:[#allocation2 + $0x118] sm:$0xff] %v4419_v0 }
  0xb6   : > { %336 = vst [vmem:[#allocation2 + $0x120] sm:$0xff] %v4419_v0  ;;  %337 = vst [vmem:[#allocation2 + $0x128] sm:$0xff] %v4419_v0 }
  0xb7   : > { %338 = vst [vmem:[#allocation2 + $0x130] sm:$0xff] %v4419_v0  ;;  %339 = vst [vmem:[#allocation2 + $0x138] sm:$0xff] %v4419_v0 }
  0xb8   : > { %340 = vst [vmem:[#allocation2 + $0x140] sm:$0xff] %v4419_v0  ;;  %341 = vst [vmem:[#allocation2 + $0x148] sm:$0xff] %v4419_v0 }
  0xb9   : > { %342 = vst [vmem:[#allocation2 + $0x150] sm:$0xff] %v4419_v0  ;;  %343 = vst [vmem:[#allocation2 + $0x158] sm:$0xff] %v4419_v0 }
  0xba   : > { %344 = vst [vmem:[#allocation2 + $0x160] sm:$0xff] %v4419_v0  ;;  %345 = vst [vmem:[#allocation2 + $0x168] sm:$0xff] %v4419_v0 }
  0xbb   : > { %346 = vst [vmem:[#allocation2 + $0x170] sm:$0xff] %v4419_v0  ;;  %347 = vst [vmem:[#allocation2 + $0x178] sm:$0xff] %v4419_v0 }
  0xbc   : > { %348 = vst [vmem:[#allocation2 + $0x180] sm:$0xff] %v4419_v0  ;;  %349 = vst [vmem:[#allocation2 + $0x188] sm:$0xff] %v4419_v0 }
  0xbd   : > { %350 = vst [vmem:[#allocation2 + $0x190] sm:$0xff] %v4419_v0  ;;  %351 = vst [vmem:[#allocation2 + $0x198] sm:$0xff] %v4419_v0 }
  0xbe   : > { %352 = vst [vmem:[#allocation2 + $0x1a0] sm:$0xff] %v4419_v0  ;;  %353 = vst [vmem:[#allocation2 + $0x1a8] sm:$0xff] %v4419_v0 }
  0xbf   : > { %354 = vst [vmem:[#allocation2 + $0x1b0] sm:$0xff] %v4419_v0  ;;  %355 = vst [vmem:[#allocation2 + $0x1b8] sm:$0xff] %v4419_v0 }
  0xc0   : > { %356 = vst [vmem:[#allocation2 + $0x1c0] sm:$0xff] %v4419_v0  ;;  %357 = vst [vmem:[#allocation2 + $0x1c8] sm:$0xff] %v4419_v0 }
  0xc1   : > { %358 = vst [vmem:[#allocation2 + $0x1d0] sm:$0xff] %v4419_v0  ;;  %359 = vst [vmem:[#allocation2 + $0x1d8] sm:$0xff] %v4419_v0 }
  0xc2   : > { %360 = vst [vmem:[#allocation2 + $0x1e0] sm:$0xff] %v4419_v0  ;;  %361 = vst [vmem:[#allocation2 + $0x1e8] sm:$0xff] %v4419_v0 }
  0xc3   : > { %362 = vst [vmem:[#allocation2 + $0x1f0] sm:$0xff] %v4419_v0  ;;  %363 = vst [vmem:[#allocation2 + $0x1f8] sm:$0xff] %v4419_v0 }
  0xc4 PF: > { %s5260_s17 = sld [smem:[#allocation21_spill]]  ;;  %s5261_s5 = sld [smem:[#allocation20_spill]] }
  0xca   : > { %s364_s29 = sld [smem:[#allocation5 + %s5260_s17]] }
  0xd0   : > { %p3310_p0 = scmp.ge.s32.totalorder %s5261_s5, %s364_s29 }
  0xd1   : > { %v3984_v1 = vld [vmem:[%s4750_s11 + $0x4] ss:$8 sps:$4 sm:$0xff] (!%p3310_p0)   ;;  %v3988_v3 = vld [vmem:[%s4750_s11] ss:$8 sps:$4 sm:$0xff] (!%p3310_p0)   ;;  %v3990_v5 = vld [vmem:[%s4750_s11 + $0x14] ss:$8 sps:$4 sm:$0xff] (!%p3310_p0)  }
  0xd2   : > { %368 = sbr.rel (%p3310_p0) target bundleno = 743 (0x2e7), region = 44  ;;  %v3986_v2 = vld [vmem:[%s4750_s11 + $0x204] ss:$8 sps:$4 sm:$0xff] (!%p3310_p0)   ;;  %1969 = vmatprep.subr.bf16.mxu1 (!%p3310_p0), %v3984_v1  ;;  %v3989_v4 = vld [vmem:[%s4750_s11 + $0x200] ss:$8 sps:$4 sm:$0xff] (!%p3310_p0)   ;;  %v4883_v51 = vld [vmem:[%s4743_s18 + $0x10] sm:$0xff] (!%p3310_p0) }
  0xd3   : > { %2355 = vmatprep.subr.bf16.mxu0 (!%p3310_p0), %v3986_v2  ;;  %1970 = vmatpush1.bf16.msra.mxu1 (!%p3310_p0), %v3988_v3  ;;  %v3992_v6 = vld [vmem:[%s4750_s11 + $0x214] ss:$8 sps:$4 sm:$0xff] (!%p3310_p0)   ;;  %v3994_v7 = vld [vmem:[%s4750_s11 + $0x10] ss:$8 sps:$4 sm:$0xff] (!%p3310_p0)   ;;  %v3996_v9 = vld [vmem:[%s4750_s11 + $0x24] ss:$8 sps:$4 sm:$0xff] (!%p3310_p0)  }
  0xd4   : > { %2356 = vmatpush1.bf16.msra.mxu0 (!%p3310_p0), %v3989_v4  ;;  %1971 = vmatprep.subr.bf16.mxu1 (!%p3310_p0), %v3990_v5  ;;  %v3995_v8 = vld [vmem:[%s4750_s11 + $0x210] ss:$8 sps:$4 sm:$0xff] (!%p3310_p0)   ;;  %v3998_v10 = vld [vmem:[%s4750_s11 + $0x224] ss:$8 sps:$4 sm:$0xff] (!%p3310_p0)   ;;  %v4000_v11 = vld [vmem:[%s4750_s11 + $0x20] ss:$8 sps:$4 sm:$0xff] (!%p3310_p0)  }
  0xd5   : > { %2357 = vmatprep.subr.bf16.mxu0 (!%p3310_p0), %v3992_v6  ;;  %v4001_v12 = vld [vmem:[%s4750_s11 + $0x220] ss:$8 sps:$4 sm:$0xff] (!%p3310_p0)   ;;  %v4002_v13 = vld [vmem:[%s4750_s11 + $0x34] ss:$8 sps:$4 sm:$0xff] (!%p3310_p0)   ;;  %v4006_v15 = vld [vmem:[%s4750_s11 + $0x30] ss:$8 sps:$4 sm:$0xff] (!%p3310_p0)  }
  0xd6   : > { %v4004_v14 = vld [vmem:[%s4750_s11 + $0x234] ss:$8 sps:$4 sm:$0xff] (!%p3310_p0)   ;;  %v4007_v16 = vld [vmem:[%s4750_s11 + $0x230] ss:$8 sps:$4 sm:$0xff] (!%p3310_p0)   ;;  %v4008_v17 = vld [vmem:[%s4750_s11 + $0x44] ss:$8 sps:$4 sm:$0xff] (!%p3310_p0)  }
  0xd7   : > { %1972 = vmatpush1.bf16.msra.mxu1 (!%p3310_p0), %v3994_v7  ;;  %v4010_v18 = vld [vmem:[%s4750_s11 + $0x244] ss:$8 sps:$4 sm:$0xff] (!%p3310_p0)   ;;  %v4012_v19 = vld [vmem:[%s4750_s11 + $0x40] ss:$8 sps:$4 sm:$0xff] (!%p3310_p0)   ;;  %v4014_v21 = vld [vmem:[%s4750_s11 + $0x54] ss:$8 sps:$4 sm:$0xff] (!%p3310_p0)  }
  0xd8   : > { %2358 = vmatpush1.bf16.msra.mxu0 (!%p3310_p0), %v3995_v8  ;;  %1973 = vmatprep.subr.bf16.mxu1 (!%p3310_p0), %v3996_v9  ;;  %v4013_v20 = vld [vmem:[%s4750_s11 + $0x240] ss:$8 sps:$4 sm:$0xff] (!%p3310_p0)   ;;  %v4016_v22 = vld [vmem:[%s4750_s11 + $0x254] ss:$8 sps:$4 sm:$0xff] (!%p3310_p0)   ;;  %v4018_v23 = vld [vmem:[%s4750_s11 + $0x50] ss:$8 sps:$4 sm:$0xff] (!%p3310_p0)  }
  0xd9   : > { %2359 = vmatprep.subr.bf16.mxu0 %v3998_v10  ;;  %v4019_v24 = vld [vmem:[%s4750_s11 + $0x250] ss:$8 sps:$4 sm:$0xff]   ;;  %v4020_v25 = vld [vmem:[%s4750_s11 + $0x64] ss:$8 sps:$4 sm:$0xff]   ;;  %v4024_v27 = vld [vmem:[%s4750_s11 + $0x60] ss:$8 sps:$4 sm:$0xff]  }
  0xda   : > { %v4022_v26 = vld [vmem:[%s4750_s11 + $0x264] ss:$8 sps:$4 sm:$0xff]   ;;  %v4025_v28 = vld [vmem:[%s4750_s11 + $0x260] ss:$8 sps:$4 sm:$0xff]   ;;  %v4026_v29 = vld [vmem:[%s4750_s11 + $0x74] ss:$8 sps:$4 sm:$0xff]  }
  0xdb   : > { %1974 = vmatpush1.bf16.msra.mxu1 %v4000_v11  ;;  %v4028_v30 = vld [vmem:[%s4750_s11 + $0x274] ss:$8 sps:$4 sm:$0xff]   ;;  %v4030_v31 = vld [vmem:[%s4750_s11 + $0x70] ss:$8 sps:$4 sm:$0xff]   ;;  %v4032_v33 = vld [vmem:[%s4750_s11 + $0x84] ss:$8 sps:$4 sm:$0xff]  }
  0xdc   : > { %2360 = vmatpush1.bf16.msra.mxu0 %v4001_v12  ;;  %1975 = vmatprep.subr.bf16.mxu1 %v4002_v13  ;;  %v4031_v32 = vld [vmem:[%s4750_s11 + $0x270] ss:$8 sps:$4 sm:$0xff]   ;;  %v4034_v34 = vld [vmem:[%s4750_s11 + $0x284] ss:$8 sps:$4 sm:$0xff]   ;;  %v4036_v35 = vld [vmem:[%s4750_s11 + $0x80] ss:$8 sps:$4 sm:$0xff]  }
  0xdd   : > { %2361 = vmatprep.subr.bf16.mxu0 %v4004_v14  ;;  %v4037_v36 = vld [vmem:[%s4750_s11 + $0x280] ss:$8 sps:$4 sm:$0xff]   ;;  %v4038_v37 = vld [vmem:[%s4750_s11 + $0x94] ss:$8 sps:$4 sm:$0xff]   ;;  %v4042_v39 = vld [vmem:[%s4750_s11 + $0x90] ss:$8 sps:$4 sm:$0xff]  }
  0xde   : > { %v4040_v38 = vld [vmem:[%s4750_s11 + $0x294] ss:$8 sps:$4 sm:$0xff]   ;;  %v4043_v40 = vld [vmem:[%s4750_s11 + $0x290] ss:$8 sps:$4 sm:$0xff]   ;;  %v4044_v41 = vld [vmem:[%s4750_s11 + $0xa4] ss:$8 sps:$4 sm:$0xff]  }
  0xdf   : > { %1976 = vmatpush1.bf16.msra.mxu1 %v4006_v15  ;;  %v4046_v42 = vld [vmem:[%s4750_s11 + $0x2a4] ss:$8 sps:$4 sm:$0xff]   ;;  %v4048_v43 = vld [vmem:[%s4750_s11 + $0xa0] ss:$8 sps:$4 sm:$0xff]   ;;  %v4050_v45 = vld [vmem:[%s4750_s11 + $0xb4] ss:$8 sps:$4 sm:$0xff]  }
  0xe0   : > { %2362 = vmatpush1.bf16.msra.mxu0 %v4007_v16  ;;  %1977 = vmatprep.subr.bf16.mxu1 %v4008_v17  ;;  %v4049_v44 = vld [vmem:[%s4750_s11 + $0x2a0] ss:$8 sps:$4 sm:$0xff]   ;;  %v4052_v46 = vld [vmem:[%s4750_s11 + $0x2b4] ss:$8 sps:$4 sm:$0xff]   ;;  %v4054_v47 = vld [vmem:[%s4750_s11 + $0xb0] ss:$8 sps:$4 sm:$0xff]  }
  0xe1   : > { %2363 = vmatprep.subr.bf16.mxu0 %v4010_v18  ;;  %v4055_v48 = vld [vmem:[%s4750_s11 + $0x2b0] ss:$8 sps:$4 sm:$0xff]   ;;  %v4877_v49 = vld [vmem:[%s4743_s18] sm:$0xff]  ;;  %v4062_v59 = vld [vmem:[%s4750_s11 + $0xd4] ss:$8 sps:$4 sm:$0xff]  }
  0xe2   : > { %v4880_v50 = vld [vmem:[%s4743_s18 + $0x20] sm:$0xff]  ;;  %v439_v52 = vld [vmem:[%s4743_s18 + $0x30] sm:$0xff] }
  0xe3   : > { %1978 = vmatpush1.bf16.msra.mxu1 %v4012_v19  ;;  %v4056_v53 = vld [vmem:[%s4750_s11 + $0xc4] ss:$8 sps:$4 sm:$0xff]   ;;  %v3312_v54 = vcombine.high %v4877_v49, %v4880_v50  ;;  %v3316_v56 = vcombine.high %v4883_v51, %v439_v52  ;;  %v4060_v57 = vld [vmem:[%s4750_s11 + $0xc0] ss:$8 sps:$4 sm:$0xff]   ;;  %v4064_v60 = vld [vmem:[%s4750_s11 + $0x2d4] ss:$8 sps:$4 sm:$0xff]   ;;  %v3311_v13 = vcombine.low %v4877_v49, %v4880_v50  ;;  %v3315_v14 = vcombine.low %v4883_v51, %v439_v52 }
  0xe4   : > { %2364 = vmatpush1.bf16.msra.mxu0 %v4013_v20  ;;  %1979 = vmatprep.subr.bf16.mxu1 %v4014_v21  ;;  %v4058_v55 = vld [vmem:[%s4750_s11 + $0x2c4] ss:$8 sps:$4 sm:$0xff]   ;;  %v4061_v58 = vld [vmem:[%s4750_s11 + $0x2c0] ss:$8 sps:$4 sm:$0xff]   ;;  %v4066_v61 = vld [vmem:[%s4750_s11 + $0xd0] ss:$8 sps:$4 sm:$0xff]  }
  0xe5   : > { %2365 = vmatprep.subr.bf16.mxu0 %v4016_v22  ;;  %2001 = vmatprep.mubr.bf16.mxu1 %v3312_v54  ;;  %v4067_v62 = vld [vmem:[%s4750_s11 + $0x2d0] ss:$8 sps:$4 sm:$0xff]   ;;  %v4068_v63 = vld [vmem:[%s4750_s11 + $0xe4] ss:$8 sps:$4 sm:$0xff]   ;;  %v4072_v1 = vld [vmem:[%s4750_s11 + $0xe0] ss:$8 sps:$4 sm:$0xff]  }
  0xe6   : > { %2387 = vmatprep.mubr.bf16.mxu0 %v3316_v56  ;;  %v4070_v0 = vld [vmem:[%s4750_s11 + $0x2e4] ss:$8 sps:$4 sm:$0xff]   ;;  %v4073_v2 = vld [vmem:[%s4750_s11 + $0x2e0] ss:$8 sps:$4 sm:$0xff]   ;;  %v4074_v3 = vld [vmem:[%s4750_s11 + $0xf4] ss:$8 sps:$4 sm:$0xff]  }
  0xe7   : > { %1980 = vmatpush1.bf16.msra.mxu1 %v4018_v23  ;;  %v4076_v4 = vld [vmem:[%s4750_s11 + $0x2f4] ss:$8 sps:$4 sm:$0xff]   ;;  %v4078_v5 = vld [vmem:[%s4750_s11 + $0xf0] ss:$8 sps:$4 sm:$0xff]   ;;  %v4082_v7 = vld [vmem:[%s4750_s11 + $0x104] ss:$8 sps:$4 sm:$0xff]  }
  0xe8   : > { %2366 = vmatpush1.bf16.msra.mxu0 %v4019_v24  ;;  %1981 = vmatprep.subr.bf16.mxu1 %v4020_v25  ;;  %v4079_v6 = vld [vmem:[%s4750_s11 + $0x2f0] ss:$8 sps:$4 sm:$0xff]   ;;  %v4085_v8 = vld [vmem:[%s4750_s11 + $0x304] ss:$8 sps:$4 sm:$0xff]   ;;  %v4080_v15 = vld [vmem:[%s4750_s11 + $0x100] ss:$8 sps:$4 sm:$0xff]  }
  0xe9   : > { %2367 = vmatprep.subr.bf16.mxu0 %v4022_v26  ;;  %v441_v9 = vld [vmem:[%s4743_s18 + $0x40] sm:$0xff]  ;;  %v443_v11 = vld [vmem:[%s4743_s18 + $0x50] sm:$0xff] }
  0xea   : > { %v445_v10 = vld [vmem:[%s4743_s18 + $0x60] sm:$0xff]  ;;  %v447_v12 = vld [vmem:[%s4743_s18 + $0x70] sm:$0xff] }
  0xeb   : > { %1982 = vmatpush1.bf16.msra.mxu1 %v4024_v27  ;;  %v4083_v16 = vld [vmem:[%s4750_s11 + $0x300] ss:$8 sps:$4 sm:$0xff]   ;;  %v3320_v17 = vcombine.high %v441_v9, %v445_v10  ;;  %v3324_v18 = vcombine.high %v443_v11, %v447_v12  ;;  %v4086_v19 = vld [vmem:[%s4750_s11 + $0x110] ss:$8 sps:$4 sm:$0xff]   ;;  %v4088_v20 = vld [vmem:[%s4750_s11 + $0x114] ss:$8 sps:$4 sm:$0xff]  }
  0xec   : > { %2368 = vmatpush1.bf16.msra.mxu0 %v4025_v28  ;;  %1983 = vmatprep.subr.bf16.mxu1 %v4026_v29  ;;  %v4089_v21 = vld [vmem:[%s4750_s11 + $0x310] ss:$8 sps:$4 sm:$0xff]   ;;  %v4091_v22 = vld [vmem:[%s4750_s11 + $0x314] ss:$8 sps:$4 sm:$0xff]   ;;  %v449_v23 = vld [vmem:[%s4743_s18 + $0x80] sm:$0xff]  ;;  %v3319_v29 = vcombine.low %v441_v9, %v445_v10 }
  0xed   : > { %2369 = vmatprep.subr.bf16.mxu0 %v4028_v30  ;;  %v453_v24 = vld [vmem:[%s4743_s18 + $0xa0] sm:$0xff]  ;;  %v451_v25 = vld [vmem:[%s4743_s18 + $0x90] sm:$0xff]  ;;  %v3323_v30 = vcombine.low %v443_v11, %v447_v12 }
  0xee   : > { %v455_v26 = vld [vmem:[%s4743_s18 + $0xb0] sm:$0xff]  ;;  %v4094_v27 = vld [vmem:[%s4750_s11 + $0x124] ss:$8 sps:$4 sm:$0xff]   ;;  %v4104_v49 = vld [vmem:[%s4750_s11 + $0x140] ss:$8 sps:$4 sm:$0xff]  }
  0xef   : > { %1984 = vmatpush1.bf16.msra.mxu1 %v4030_v31  ;;  %v4097_v28 = vld [vmem:[%s4750_s11 + $0x324] ss:$8 sps:$4 sm:$0xff]   ;;  %v3328_v31 = vcombine.high %v449_v23, %v453_v24  ;;  %v4107_v50 = vld [vmem:[%s4750_s11 + $0x340] ss:$8 sps:$4 sm:$0xff]   ;;  %v4112_v51 = vld [vmem:[%s4750_s11 + $0x154] ss:$8 sps:$4 sm:$0xff]  }
  0xf0   : > { %2370 = vmatpush1.bf16.msra.mxu0 %v4031_v32  ;;  %1985 = vmatprep.subr.bf16.mxu1 %v4032_v33  ;;  %v3332_v32 = vcombine.high %v451_v25, %v455_v26  ;;  %v4092_v33 = vld [vmem:[%s4750_s11 + $0x120] ss:$8 sps:$4 sm:$0xff]   ;;  %v4115_v52 = vld [vmem:[%s4750_s11 + $0x354] ss:$8 sps:$4 sm:$0xff]   ;;  %v4122_v9 = vld [vmem:[%s4750_s11 + $0x170] ss:$8 sps:$4 sm:$0xff]  }
  0xf1   : > { %2371 = vmatprep.subr.bf16.mxu0 %v4034_v34  ;;  %v4095_v34 = vld [vmem:[%s4750_s11 + $0x320] ss:$8 sps:$4 sm:$0xff]   ;;  %v471_v56 = vld [vmem:[%s4743_s18 + $0x130] sm:$0xff]  ;;  %v4130_v11 = vld [vmem:[%s4750_s11 + $0x184] ss:$8 sps:$4 sm:$0xff]  }
  0xf2   : > { %v469_v54 = vld [vmem:[%s4743_s18 + $0x120] sm:$0xff]  ;;  %v4125_v10 = vld [vmem:[%s4750_s11 + $0x370] ss:$8 sps:$4 sm:$0xff]  }
  0xf3   : > { %1986 = vmatpush1.bf16.msra.mxu1 %v4036_v35  ;;  %v4100_v35 = vld [vmem:[%s4750_s11 + $0x134] ss:$8 sps:$4 sm:$0xff]   ;;  %v4133_v12 = vld [vmem:[%s4750_s11 + $0x384] ss:$8 sps:$4 sm:$0xff]  }
  0xf4   : > { %2372 = vmatpush1.bf16.msra.mxu0 %v4037_v36  ;;  %1987 = vmatprep.subr.bf16.mxu1 %v4038_v37  ;;  %v4103_v36 = vld [vmem:[%s4750_s11 + $0x334] ss:$8 sps:$4 sm:$0xff]   ;;  %v457_v37 = vld [vmem:[%s4743_s18 + $0xc0] sm:$0xff] }
  0xf5   : > { %2373 = vmatprep.subr.bf16.mxu0 %v4040_v38  ;;  %v461_v38 = vld [vmem:[%s4743_s18 + $0xe0] sm:$0xff] }
  0xf7   : > { %1988 = vmatpush1.bf16.msra.mxu1 %v4042_v39  ;;  %v459_v39 = vld [vmem:[%s4743_s18 + $0xd0] sm:$0xff] }
  0xf8   : > { %2374 = vmatpush1.bf16.msra.mxu0 %v4043_v40  ;;  %1989 = vmatprep.subr.bf16.mxu1 %v4044_v41  ;;  %v463_v40 = vld [vmem:[%s4743_s18 + $0xf0] sm:$0xff] }
  0xf9   : > { %2375 = vmatprep.subr.bf16.mxu0 %v4046_v42  ;;  %v4098_v41 = vld [vmem:[%s4750_s11 + $0x130] ss:$8 sps:$4 sm:$0xff]  }
  0xfa   : > { %v4101_v42 = vld [vmem:[%s4750_s11 + $0x330] ss:$8 sps:$4 sm:$0xff]  }
  0xfb   : > { %1990 = vmatpush1.bf16.msra.mxu1 %v4048_v43  ;;  %v4106_v43 = vld [vmem:[%s4750_s11 + $0x144] ss:$8 sps:$4 sm:$0xff]  }
  0xfc   : > { %2376 = vmatpush1.bf16.msra.mxu0 %v4049_v44  ;;  %1991 = vmatprep.subr.bf16.mxu1 %v4050_v45  ;;  %v4109_v44 = vld [vmem:[%s4750_s11 + $0x344] ss:$8 sps:$4 sm:$0xff]   ;;  %v3327_v45 = vcombine.low %v449_v23, %v453_v24  ;;  %v483_v23 = vld [vmem:[%s4743_s18 + $0x190] sm:$0xff] }
  0xfd   : > { %2377 = vmatprep.subr.bf16.mxu0 %v4052_v46  ;;  %v3331_v46 = vcombine.low %v451_v25, %v455_v26  ;;  %v487_v24 = vld [vmem:[%s4743_s18 + $0x1b0] sm:$0xff] }
  0xfe   : > { %v4134_v25 = vld [vmem:[%s4750_s11 + $0x190] ss:$8 sps:$4 sm:$0xff]  }
  0xff   : > { %1992 = vmatpush1.bf16.msra.mxu1 %v4054_v47  ;;  %v3336_v47 = vcombine.high %v457_v37, %v461_v38  ;;  %v4137_v26 = vld [vmem:[%s4750_s11 + $0x390] ss:$8 sps:$4 sm:$0xff]  }
 0x100   : > { %2378 = vmatpush1.bf16.msra.mxu0 %v4055_v48  ;;  %1993 = vmatprep.subr.bf16.mxu1 %v4056_v53  ;;  %v3340_v48 = vcombine.high %v459_v39, %v463_v40  ;;  %v465_v53 = vld [vmem:[%s4743_s18 + $0x100] sm:$0xff] }
 0x101   : > { %2379 = vmatprep.subr.bf16.mxu0 %v4058_v55  ;;  %v467_v55 = vld [vmem:[%s4743_s18 + $0x110] sm:$0xff] }
 0x103   : > { %1994 = vmatpush1.bf16.msra.mxu1 %v4060_v57  ;;  %v4110_v57 = vld [vmem:[%s4750_s11 + $0x150] ss:$8 sps:$4 sm:$0xff]  }
 0x104   : > { %2380 = vmatpush1.bf16.msra.mxu0 %v4061_v58  ;;  %1995 = vmatprep.subr.bf16.mxu1 %v4062_v59  ;;  %v4113_v58 = vld [vmem:[%s4750_s11 + $0x350] ss:$8 sps:$4 sm:$0xff]   ;;  %v4118_v59 = vld [vmem:[%s4750_s11 + $0x164] ss:$8 sps:$4 sm:$0xff]  }
 0x105   : > { %2381 = vmatprep.subr.bf16.mxu0 %v4064_v60  ;;  %v4121_v60 = vld [vmem:[%s4750_s11 + $0x364] ss:$8 sps:$4 sm:$0xff]  }
 0x107   : > { %1996 = vmatpush1.bf16.msra.mxu1 %v4066_v61  ;;  %v3335_v61 = vcombine.low %v457_v37, %v461_v38  ;;  %v489_v37 = vld [vmem:[%s4743_s18 + $0x1c0] sm:$0xff] }
 0x108   : > { %2382 = vmatpush1.bf16.msra.mxu0 %v4067_v62  ;;  %1997 = vmatprep.subr.bf16.mxu1 %v4068_v63  ;;  %v3339_v62 = vcombine.low %v459_v39, %v463_v40  ;;  %v3344_v63 = vcombine.high %v465_v53, %v469_v54  ;;  %v493_v38 = vld [vmem:[%s4743_s18 + $0x1e0] sm:$0xff]  ;;  %v491_v39 = vld [vmem:[%s4743_s18 + $0x1d0] sm:$0xff] }
 0x109   : > { %2383 = vmatprep.subr.bf16.mxu0 %v4070_v0  ;;  %v3348_v0 = vcombine.high %v467_v55, %v471_v56  ;;  %v495_v40 = vld [vmem:[%s4743_s18 + $0x1f0] sm:$0xff] }
 0x10b   : > { %1998 = vmatpush1.bf16.msra.mxu1 %v4072_v1  ;;  %v4116_v1 = vld [vmem:[%s4750_s11 + $0x160] ss:$8 sps:$4 sm:$0xff]  }
 0x10c   : > { %2384 = vmatpush1.bf16.msra.mxu0 %v4073_v2  ;;  %1999 = vmatprep.subr.bf16.mxu1 %v4074_v3  ;;  %v4119_v2 = vld [vmem:[%s4750_s11 + $0x360] ss:$8 sps:$4 sm:$0xff]   ;;  %v4124_v3 = vld [vmem:[%s4750_s11 + $0x174] ss:$8 sps:$4 sm:$0xff]  }
 0x10d   : > { %2385 = vmatprep.subr.bf16.mxu0 %v4076_v4  ;;  %v4127_v4 = vld [vmem:[%s4750_s11 + $0x374] ss:$8 sps:$4 sm:$0xff]  }
 0x10f   : > { %2000 = vmatpush1.bf16.msra.mxu1 %v4078_v5  ;;  %v473_v5 = vld [vmem:[%s4743_s18 + $0x140] sm:$0xff] }
 0x110   : > { %2386 = vmatpush1.bf16.msra.mxu0 %v4079_v6  ;;  %2162 = vmatprep.subr.bf16.mxu1 %v4082_v7  ;;  %v477_v6 = vld [vmem:[%s4743_s18 + $0x160] sm:$0xff]  ;;  %v475_v7 = vld [vmem:[%s4743_s18 + $0x150] sm:$0xff] }
 0x111   : > { %2548 = vmatprep.subr.bf16.mxu0 %v4085_v8  ;;  %v479_v8 = vld [vmem:[%s4743_s18 + $0x170] sm:$0xff] }
 0x112   : > { %2002 = vmatmul.mubr.bf16.vlgmr.msra.gmra.mrb[0].mxu1 %v3311_v13  ;;  %v3343_v13 = vcombine.low %v465_v53, %v469_v54  ;;  %v497_v53 = vld [vmem:[%s4743_s18 + $0x200] sm:$0xff] }
 0x113   : > { %2388 = vmatmul.mubr.bf16.vlgmr.msra.gmra.mrb[0].mxu0 %v3315_v14  ;;  %2163 = vmatpush1.bf16.msra.mxu1 %v4080_v15  ;;  %v3347_v14 = vcombine.low %v467_v55, %v471_v56  ;;  %v3352_v15 = vcombine.high %v473_v5, %v477_v6  ;;  %v501_v54 = vld [vmem:[%s4743_s18 + $0x220] sm:$0xff]  ;;  %v499_v55 = vld [vmem:[%s4743_s18 + $0x210] sm:$0xff] }
 0x114   : > { %2549 = vmatpush1.bf16.msra.mxu0 %v4083_v16  ;;  %2011 = vmatprep.mubr.bf16.mxu1 %v3320_v17  ;;  %v3356_v16 = vcombine.high %v475_v7, %v479_v8  ;;  %v4128_v17 = vld [vmem:[%s4750_s11 + $0x180] ss:$8 sps:$4 sm:$0xff]   ;;  %v503_v56 = vld [vmem:[%s4743_s18 + $0x230] sm:$0xff] }
 0x115   : > { %2397 = vmatprep.mubr.bf16.mxu0 %v3324_v18  ;;  %2164 = vmatprep.subr.bf16.mxu1 %v4088_v20  ;;  %v4131_v18 = vld [vmem:[%s4750_s11 + $0x380] ss:$8 sps:$4 sm:$0xff]   ;;  %v4139_v20 = vld [vmem:[%s4750_s11 + $0x394] ss:$8 sps:$4 sm:$0xff]  }
 0x116   : > { %2550 = vmatprep.subr.bf16.mxu0 %v4091_v22  ;;  %v485_v22 = vld [vmem:[%s4743_s18 + $0x1a0] sm:$0xff] }
 0x117   : > { %2165 = vmatpush1.bf16.msra.mxu1 %v4086_v19  ;;  %v4136_v19 = vld [vmem:[%s4750_s11 + $0x194] ss:$8 sps:$4 sm:$0xff]  }
 0x118   : > { %2551 = vmatpush1.bf16.msra.mxu0 %v4089_v21  ;;  %2166 = vmatprep.subr.bf16.mxu1 %v4094_v27  ;;  %v481_v21 = vld [vmem:[%s4743_s18 + $0x180] sm:$0xff] }
 0x119   : > { %2552 = vmatprep.subr.bf16.mxu0 %v4097_v28  ;;  %v4142_v27 = vld [vmem:[%s4750_s11 + $0x1a4] ss:$8 sps:$4 sm:$0xff]  }
 0x11a   : > { %2012 = vmatmul.mubr.bf16.gmra.mrb[4].mxu1 %v3319_v29  ;;  %v4145_v28 = vld [vmem:[%s4750_s11 + $0x3a4] ss:$8 sps:$4 sm:$0xff]   ;;  %v3351_v29 = vcombine.low %v473_v5, %v477_v6 }
 0x11b   : > { %2398 = vmatmul.mubr.bf16.gmra.mrb[4].mxu0 %v3323_v30  ;;  %2021 = vmatprep.mubr.bf16.mxu1 %v3328_v31  ;;  %v3355_v30 = vcombine.low %v475_v7, %v479_v8  ;;  %v3360_v31 = vcombine.high %v481_v21, %v485_v22  ;;  %v505_v5 = vld [vmem:[%s4743_s18 + $0x240] sm:$0xff]  ;;  %v507_v7 = vld [vmem:[%s4743_s18 + $0x250] sm:$0xff] }
 0x11c   : > { %2407 = vmatprep.mubr.bf16.mxu0 %v3332_v32  ;;  %2167 = vmatpush1.bf16.msra.mxu1 %v4092_v33  ;;  %v3364_v32 = vcombine.high %v483_v23, %v487_v24  ;;  %v4140_v33 = vld [vmem:[%s4750_s11 + $0x1a0] ss:$8 sps:$4 sm:$0xff]   ;;  %v511_v8 = vld [vmem:[%s4743_s18 + $0x270] sm:$0xff] }
 0x11d   : > { %2553 = vmatpush1.bf16.msra.mxu0 %v4095_v34  ;;  %2168 = vmatprep.subr.bf16.mxu1 %v4100_v35  ;;  %v4143_v34 = vld [vmem:[%s4750_s11 + $0x3a0] ss:$8 sps:$4 sm:$0xff]   ;;  %v4148_v35 = vld [vmem:[%s4750_s11 + $0x1b4] ss:$8 sps:$4 sm:$0xff]  }
 0x11e   : > { %2554 = vmatprep.subr.bf16.mxu0 %v4103_v36  ;;  %v4151_v36 = vld [vmem:[%s4750_s11 + $0x3b4] ss:$8 sps:$4 sm:$0xff]   ;;  %v509_v6 = vld [vmem:[%s4743_s18 + $0x260] sm:$0xff] }
 0x120   : > { %2169 = vmatpush1.bf16.msra.mxu1 %v4098_v41  ;;  %v4146_v41 = vld [vmem:[%s4750_s11 + $0x1b0] ss:$8 sps:$4 sm:$0xff]  }
 0x121   : > { %2555 = vmatpush1.bf16.msra.mxu0 %v4101_v42  ;;  %2170 = vmatprep.subr.bf16.mxu1 %v4106_v43  ;;  %v4149_v42 = vld [vmem:[%s4750_s11 + $0x3b0] ss:$8 sps:$4 sm:$0xff]   ;;  %v4154_v43 = vld [vmem:[%s4750_s11 + $0x1c4] ss:$8 sps:$4 sm:$0xff]  }
 0x122   : > { %2556 = vmatprep.subr.bf16.mxu0 %v4109_v44  ;;  %2022 = vmatmul.mubr.bf16.gmra.mrb[8].mxu1 %v3327_v45  ;;  %v4157_v44 = vld [vmem:[%s4750_s11 + $0x3c4] ss:$8 sps:$4 sm:$0xff]   ;;  %v3359_v45 = vcombine.low %v481_v21, %v485_v22 }
 0x123   : > { %2408 = vmatmul.mubr.bf16.gmra.mrb[8].mxu0 %v3331_v46  ;;  %2031 = vmatprep.mubr.bf16.mxu1 %v3336_v47  ;;  %v3363_v46 = vcombine.low %v483_v23, %v487_v24  ;;  %v3368_v47 = vcombine.high %v489_v37, %v493_v38  ;;  %v521_v23 = vld [vmem:[%s4743_s18 + $0x2c0] sm:$0xff] }
 0x124   : > { %2417 = vmatprep.mubr.bf16.mxu0 %v3340_v48  ;;  %2171 = vmatpush1.bf16.msra.mxu1 %v4104_v49  ;;  %v3372_v48 = vcombine.high %v491_v39, %v495_v40  ;;  %v4152_v49 = vld [vmem:[%s4750_s11 + $0x1c0] ss:$8 sps:$4 sm:$0xff]  }
 0x125   : > { %2557 = vmatpush1.bf16.msra.mxu0 %v4107_v50  ;;  %2172 = vmatprep.subr.bf16.mxu1 %v4112_v51  ;;  %v4155_v50 = vld [vmem:[%s4750_s11 + $0x3c0] ss:$8 sps:$4 sm:$0xff]   ;;  %v4160_v51 = vld [vmem:[%s4750_s11 + $0x1d4] ss:$8 sps:$4 sm:$0xff]  }
 0x126   : > { %2558 = vmatprep.subr.bf16.mxu0 %v4115_v52  ;;  %v4163_v52 = vld [vmem:[%s4750_s11 + $0x3d4] ss:$8 sps:$4 sm:$0xff]   ;;  %v525_v24 = vld [vmem:[%s4743_s18 + $0x2e0] sm:$0xff] }
 0x128   : > { %2173 = vmatpush1.bf16.msra.mxu1 %v4110_v57  ;;  %v4158_v57 = vld [vmem:[%s4750_s11 + $0x1d0] ss:$8 sps:$4 sm:$0xff]  }
 0x129   : > { %2559 = vmatpush1.bf16.msra.mxu0 %v4113_v58  ;;  %2174 = vmatprep.subr.bf16.mxu1 %v4118_v59  ;;  %v4161_v58 = vld [vmem:[%s4750_s11 + $0x3d0] ss:$8 sps:$4 sm:$0xff]   ;;  %v4166_v59 = vld [vmem:[%s4750_s11 + $0x1e4] ss:$8 sps:$4 sm:$0xff]  }
 0x12a   : > { %2560 = vmatprep.subr.bf16.mxu0 %v4121_v60  ;;  %2032 = vmatmul.mubr.bf16.gmra.mrb[12].mxu1 %v3335_v61  ;;  %v4169_v60 = vld [vmem:[%s4750_s11 + $0x3e4] ss:$8 sps:$4 sm:$0xff]   ;;  %v3367_v61 = vcombine.low %v489_v37, %v493_v38 }
 0x12b   : > { %2418 = vmatmul.mubr.bf16.gmra.mrb[12].mxu0 %v3339_v62  ;;  %2041 = vmatprep.mubr.bf16.mxu1 %v3344_v63  ;;  %v3371_v62 = vcombine.low %v491_v39, %v495_v40  ;;  %v3376_v63 = vcombine.high %v497_v53, %v501_v54  ;;  %v537_v39 = vld [vmem:[%s4743_s18 + $0x340] sm:$0xff] }
 0x12c   : > { %2427 = vmatprep.mubr.bf16.mxu0 %v3348_v0  ;;  %2175 = vmatpush1.bf16.msra.mxu1 %v4116_v1  ;;  %v3380_v0 = vcombine.high %v499_v55, %v503_v56  ;;  %v4164_v1 = vld [vmem:[%s4750_s11 + $0x1e0] ss:$8 sps:$4 sm:$0xff]  }
 0x12d   : > { %2561 = vmatpush1.bf16.msra.mxu0 %v4119_v2  ;;  %2176 = vmatprep.subr.bf16.mxu1 %v4124_v3  ;;  %v4167_v2 = vld [vmem:[%s4750_s11 + $0x3e0] ss:$8 sps:$4 sm:$0xff]   ;;  %v4172_v3 = vld [vmem:[%s4750_s11 + $0x1f4] ss:$8 sps:$4 sm:$0xff]  }
 0x12e   : > { %2562 = vmatprep.subr.bf16.mxu0 %v4127_v4  ;;  %v4175_v4 = vld [vmem:[%s4750_s11 + $0x3f4] ss:$8 sps:$4 sm:$0xff]   ;;  %v541_v40 = vld [vmem:[%s4743_s18 + $0x360] sm:$0xff] }
 0x130   : > { %2177 = vmatpush1.bf16.msra.mxu1 %v4122_v9  ;;  %v4170_v9 = vld [vmem:[%s4750_s11 + $0x1f0] ss:$8 sps:$4 sm:$0xff]  }
 0x131   : > { %2563 = vmatpush1.bf16.msra.mxu0 %v4125_v10  ;;  %2178 = vmatprep.subr.bf16.mxu1 %v4130_v11  ;;  %v4173_v10 = vld [vmem:[%s4750_s11 + $0x3f0] ss:$8 sps:$4 sm:$0xff]   ;;  %v3375_v11 = vcombine.low %v497_v53, %v501_v54 }
 0x132   : > { %2564 = vmatprep.subr.bf16.mxu0 %v4133_v12  ;;  %2042 = vmatmul.mubr.bf16.gmra.mrb[16].mxu1 %v3343_v13  ;;  %v3379_v12 = vcombine.low %v499_v55, %v503_v56  ;;  %v3384_v13 = vcombine.high %v505_v5, %v509_v6  ;;  %v553_v55 = vld [vmem:[%s4743_s18 + $0x3c0] sm:$0xff] }
 0x133   : > { %2428 = vmatmul.mubr.bf16.gmra.mrb[16].mxu0 %v3347_v14  ;;  %2051 = vmatprep.mubr.bf16.mxu1 %v3352_v15  ;;  %v3388_v14 = vcombine.high %v507_v7, %v511_v8  ;;  %v513_v15 = vld [vmem:[%s4743_s18 + $0x280] sm:$0xff] }
 0x134   : > { %2437 = vmatprep.mubr.bf16.mxu0 %v3356_v16  ;;  %2179 = vmatpush1.bf16.msra.mxu1 %v4128_v17  ;;  %v517_v16 = vld [vmem:[%s4743_s18 + $0x2a0] sm:$0xff]  ;;  %v515_v17 = vld [vmem:[%s4743_s18 + $0x290] sm:$0xff] }
 0x135   : > { %2565 = vmatpush1.bf16.msra.mxu0 %v4131_v18  ;;  %2180 = vmatprep.subr.bf16.mxu1 %v4136_v19  ;;  %v519_v18 = vld [vmem:[%s4743_s18 + $0x2b0] sm:$0xff]  ;;  %v3383_v19 = vcombine.low %v505_v5, %v509_v6  ;;  %v3392_v21 = vcombine.high %v513_v15, %v517_v16  ;;  %v557_v56 = vld [vmem:[%s4743_s18 + $0x3e0] sm:$0xff] }
 0x136   : > { %2566 = vmatprep.subr.bf16.mxu0 %v4139_v20  ;;  %v3387_v20 = vcombine.low %v507_v7, %v511_v8  ;;  %v3396_v22 = vcombine.high %v515_v17, %v519_v18  ;;  %v442_v7 = vld [vmem:[%s4743_s18 + $0x48] sm:$0xff] }
 0x137   : > { %v446_v8 = vld [vmem:[%s4743_s18 + $0x68] sm:$0xff] }
 0x138   : > { %2181 = vmatpush1.bf16.msra.mxu1 %v4134_v25  ;;  %v523_v25 = vld [vmem:[%s4743_s18 + $0x2d0] sm:$0xff] }
 0x139   : > { %2567 = vmatpush1.bf16.msra.mxu0 %v4137_v26  ;;  %2182 = vmatprep.subr.bf16.mxu1 %v4142_v27  ;;  %v527_v26 = vld [vmem:[%s4743_s18 + $0x2f0] sm:$0xff]  ;;  %v3391_v27 = vcombine.low %v513_v15, %v517_v16  ;;  %v450_v15 = vld [vmem:[%s4743_s18 + $0x88] sm:$0xff] }
 0x13a   : > { %2568 = vmatprep.subr.bf16.mxu0 %v4145_v28  ;;  %2052 = vmatmul.mubr.bf16.gmra.mrb[20].mxu1 %v3351_v29  ;;  %v3395_v28 = vcombine.low %v515_v17, %v519_v18  ;;  %v3400_v29 = vcombine.high %v521_v23, %v525_v24  ;;  %v454_v16 = vld [vmem:[%s4743_s18 + $0xa8] sm:$0xff]  ;;  %v452_v17 = vld [vmem:[%s4743_s18 + $0x98] sm:$0xff] }
 0x13b   : > { %2438 = vmatmul.mubr.bf16.gmra.mrb[20].mxu0 %v3355_v30  ;;  %2061 = vmatprep.mubr.bf16.mxu1 %v3360_v31  ;;  %v3404_v30 = vcombine.high %v523_v25, %v527_v26  ;;  %v529_v31 = vld [vmem:[%s4743_s18 + $0x300] sm:$0xff]  ;;  %v456_v18 = vld [vmem:[%s4743_s18 + $0xb8] sm:$0xff] }
 0x13c   : > { %2447 = vmatprep.mubr.bf16.mxu0 %v3364_v32  ;;  %2183 = vmatpush1.bf16.msra.mxu1 %v4140_v33  ;;  %v533_v32 = vld [vmem:[%s4743_s18 + $0x320] sm:$0xff]  ;;  %v531_v33 = vld [vmem:[%s4743_s18 + $0x310] sm:$0xff] }
 0x13d   : > { %2569 = vmatpush1.bf16.msra.mxu0 %v4143_v34  ;;  %2184 = vmatprep.subr.bf16.mxu1 %v4148_v35  ;;  %v535_v34 = vld [vmem:[%s4743_s18 + $0x330] sm:$0xff]  ;;  %v3399_v35 = vcombine.low %v521_v23, %v525_v24  ;;  %v3408_v37 = vcombine.high %v529_v31, %v533_v32  ;;  %v458_v23 = vld [vmem:[%s4743_s18 + $0xc8] sm:$0xff] }
 0x13e   : > { %2570 = vmatprep.subr.bf16.mxu0 %v4151_v36  ;;  %v3403_v36 = vcombine.low %v523_v25, %v527_v26  ;;  %v3412_v38 = vcombine.high %v531_v33, %v535_v34  ;;  %v462_v24 = vld [vmem:[%s4743_s18 + $0xe8] sm:$0xff]  ;;  %v460_v25 = vld [vmem:[%s4743_s18 + $0xd8] sm:$0xff] }
 0x13f   : > { %v464_v26 = vld [vmem:[%s4743_s18 + $0xf8] sm:$0xff] }
 0x140   : > { %2185 = vmatpush1.bf16.msra.mxu1 %v4146_v41  ;;  %v539_v41 = vld [vmem:[%s4743_s18 + $0x350] sm:$0xff] }
 0x141   : > { %2571 = vmatpush1.bf16.msra.mxu0 %v4149_v42  ;;  %2186 = vmatprep.subr.bf16.mxu1 %v4154_v43  ;;  %v543_v42 = vld [vmem:[%s4743_s18 + $0x370] sm:$0xff]  ;;  %v3407_v43 = vcombine.low %v529_v31, %v533_v32  ;;  %v466_v31 = vld [vmem:[%s4743_s18 + $0x108] sm:$0xff] }
 0x142   : > { %2572 = vmatprep.subr.bf16.mxu0 %v4157_v44  ;;  %2062 = vmatmul.mubr.bf16.gmra.mrb[24].mxu1 %v3359_v45  ;;  %v3411_v44 = vcombine.low %v531_v33, %v535_v34  ;;  %v3416_v45 = vcombine.high %v537_v39, %v541_v40  ;;  %v470_v32 = vld [vmem:[%s4743_s18 + $0x128] sm:$0xff]  ;;  %v468_v33 = vld [vmem:[%s4743_s18 + $0x118] sm:$0xff] }
 0x143   : > { %2448 = vmatmul.mubr.bf16.gmra.mrb[24].mxu0 %v3363_v46  ;;  %2071 = vmatprep.mubr.bf16.mxu1 %v3368_v47  ;;  %v3420_v46 = vcombine.high %v539_v41, %v543_v42  ;;  %v545_v47 = vld [vmem:[%s4743_s18 + $0x380] sm:$0xff]  ;;  %v472_v34 = vld [vmem:[%s4743_s18 + $0x138] sm:$0xff] }
 0x144   : > { %2457 = vmatprep.mubr.bf16.mxu0 %v3372_v48  ;;  %2187 = vmatpush1.bf16.msra.mxu1 %v4152_v49  ;;  %v549_v48 = vld [vmem:[%s4743_s18 + $0x3a0] sm:$0xff]  ;;  %v547_v49 = vld [vmem:[%s4743_s18 + $0x390] sm:$0xff] }
 0x145   : > { %2573 = vmatpush1.bf16.msra.mxu0 %v4155_v50  ;;  %2188 = vmatprep.subr.bf16.mxu1 %v4160_v51  ;;  %v551_v50 = vld [vmem:[%s4743_s18 + $0x3b0] sm:$0xff]  ;;  %v3415_v51 = vcombine.low %v537_v39, %v541_v40  ;;  %v3424_v53 = vcombine.high %v545_v47, %v549_v48  ;;  %v474_v39 = vld [vmem:[%s4743_s18 + $0x148] sm:$0xff] }
 0x146   : > { %2574 = vmatprep.subr.bf16.mxu0 %v4163_v52  ;;  %v3419_v52 = vcombine.low %v539_v41, %v543_v42  ;;  %v3428_v54 = vcombine.high %v547_v49, %v551_v50  ;;  %v478_v40 = vld [vmem:[%s4743_s18 + $0x168] sm:$0xff]  ;;  %v476_v41 = vld [vmem:[%s4743_s18 + $0x158] sm:$0xff] }
 0x147   : > { %v480_v42 = vld [vmem:[%s4743_s18 + $0x178] sm:$0xff] }
 0x148   : > { %2189 = vmatpush1.bf16.msra.mxu1 %v4158_v57  ;;  %v555_v57 = vld [vmem:[%s4743_s18 + $0x3d0] sm:$0xff] }
 0x149   : > { %2575 = vmatpush1.bf16.msra.mxu0 %v4161_v58  ;;  %2190 = vmatprep.subr.bf16.mxu1 %v4166_v59  ;;  %v559_v58 = vld [vmem:[%s4743_s18 + $0x3f0] sm:$0xff]  ;;  %v3423_v59 = vcombine.low %v545_v47, %v549_v48  ;;  %v482_v47 = vld [vmem:[%s4743_s18 + $0x188] sm:$0xff] }
 0x14a   : > { %2576 = vmatprep.subr.bf16.mxu0 %v4169_v60  ;;  %2072 = vmatmul.mubr.bf16.gmra.mrb[28].mxu1 %v3367_v61  ;;  %v3427_v60 = vcombine.low %v547_v49, %v551_v50  ;;  %v3432_v61 = vcombine.high %v553_v55, %v557_v56  ;;  %v486_v48 = vld [vmem:[%s4743_s18 + $0x1a8] sm:$0xff]  ;;  %v484_v49 = vld [vmem:[%s4743_s18 + $0x198] sm:$0xff] }
 0x14b   : > { %2458 = vmatmul.mubr.bf16.gmra.mrb[28].mxu0 %v3371_v62  ;;  %2081 = vmatprep.mubr.bf16.mxu1 %v3376_v63  ;;  %v3436_v62 = vcombine.high %v555_v57, %v559_v58  ;;  %v434_v63 = vld [vmem:[%s4743_s18 + $0x8] sm:$0xff]  ;;  %v488_v50 = vld [vmem:[%s4743_s18 + $0x1b8] sm:$0xff] }
 0x14c   : > { %2467 = vmatprep.mubr.bf16.mxu0 %v3380_v0  ;;  %2191 = vmatpush1.bf16.msra.mxu1 %v4164_v1  ;;  %v438_v0 = vld [vmem:[%s4743_s18 + $0x28] sm:$0xff]  ;;  %v436_v1 = vld [vmem:[%s4743_s18 + $0x18] sm:$0xff] }
 0x14d   : > { %2577 = vmatpush1.bf16.msra.mxu0 %v4167_v2  ;;  %2192 = vmatprep.subr.bf16.mxu1 %v4172_v3  ;;  %v440_v2 = vld [vmem:[%s4743_s18 + $0x38] sm:$0xff]  ;;  %v3431_v3 = vcombine.low %v553_v55, %v557_v56  ;;  %v3314_v5 = vcombine.high %v434_v63, %v438_v0  ;;  %v490_v55 = vld [vmem:[%s4743_s18 + $0x1c8] sm:$0xff] }
 0x14e   : > { %2578 = vmatprep.subr.bf16.mxu0 %v4175_v4  ;;  %v3435_v4 = vcombine.low %v555_v57, %v559_v58  ;;  %v3318_v6 = vcombine.high %v436_v1, %v440_v2  ;;  %v494_v56 = vld [vmem:[%s4743_s18 + $0x1e8] sm:$0xff]  ;;  %v492_v57 = vld [vmem:[%s4743_s18 + $0x1d8] sm:$0xff] }
 0x14f   : > { %v496_v58 = vld [vmem:[%s4743_s18 + $0x1f8] sm:$0xff] }
 0x150   : > { %2193 = vmatpush1.bf16.msra.mxu1 %v4170_v9  ;;  %v444_v9 = vld [vmem:[%s4743_s18 + $0x58] sm:$0xff] }
 0x151   : > { %2579 = vmatpush1.bf16.msra.mxu0 %v4173_v10  ;;  %v448_v10 = vld [vmem:[%s4743_s18 + $0x78] sm:$0xff] }
 0x152   : > { %2082 = vmatmul.mubr.bf16.gmra.mrb[32].mxu1 %v3375_v11  ;;  %v3313_v11 = vcombine.low %v434_v63, %v438_v0  ;;  %v498_v63 = vld [vmem:[%s4743_s18 + $0x208] sm:$0xff] }
 0x153   : > { %2468 = vmatmul.mubr.bf16.gmra.mrb[32].mxu0 %v3379_v12  ;;  %2091 = vmatprep.mubr.bf16.mxu1 %v3384_v13  ;;  %v3317_v12 = vcombine.low %v436_v1, %v440_v2  ;;  %v3322_v13 = vcombine.high %v442_v7, %v446_v8  ;;  %v502_v0 = vld [vmem:[%s4743_s18 + $0x228] sm:$0xff]  ;;  %v500_v1 = vld [vmem:[%s4743_s18 + $0x218] sm:$0xff] }
 0x154   : > { %2477 = vmatprep.mubr.bf16.mxu0 %v3388_v14  ;;  %v3326_v14 = vcombine.high %v444_v9, %v448_v10  ;;  %v504_v2 = vld [vmem:[%s4743_s18 + $0x238] sm:$0xff] }
 0x15a   : > { %2092 = vmatmul.mubr.bf16.gmra.mrb[36].mxu1 %v3383_v19  ;;  %v3321_v19 = vcombine.low %v442_v7, %v446_v8  ;;  %v506_v7 = vld [vmem:[%s4743_s18 + $0x248] sm:$0xff] }
 0x15b   : > { %2478 = vmatmul.mubr.bf16.gmra.mrb[36].mxu0 %v3387_v20  ;;  %2101 = vmatprep.mubr.bf16.mxu1 %v3392_v21  ;;  %v3325_v20 = vcombine.low %v444_v9, %v448_v10  ;;  %v3330_v21 = vcombine.high %v450_v15, %v454_v16  ;;  %v510_v8 = vld [vmem:[%s4743_s18 + $0x268] sm:$0xff]  ;;  %v508_v9 = vld [vmem:[%s4743_s18 + $0x258] sm:$0xff] }
 0x15c   : > { %2487 = vmatprep.mubr.bf16.mxu0 %v3396_v22  ;;  %v3334_v22 = vcombine.high %v452_v17, %v456_v18  ;;  %v512_v10 = vld [vmem:[%s4743_s18 + $0x278] sm:$0xff] }
 0x162   : > { %2102 = vmatmul.mubr.bf16.gmra.mrb[40].mxu1 %v3391_v27  ;;  %v3329_v27 = vcombine.low %v450_v15, %v454_v16  ;;  %v514_v15 = vld [vmem:[%s4743_s18 + $0x288] sm:$0xff] }
 0x163   : > { %2488 = vmatmul.mubr.bf16.gmra.mrb[40].mxu0 %v3395_v28  ;;  %2111 = vmatprep.mubr.bf16.mxu1 %v3400_v29  ;;  %v3333_v28 = vcombine.low %v452_v17, %v456_v18  ;;  %v3338_v29 = vcombine.high %v458_v23, %v462_v24  ;;  %v518_v16 = vld [vmem:[%s4743_s18 + $0x2a8] sm:$0xff]  ;;  %v516_v17 = vld [vmem:[%s4743_s18 + $0x298] sm:$0xff] }
 0x164   : > { %2497 = vmatprep.mubr.bf16.mxu0 %v3404_v30  ;;  %v3342_v30 = vcombine.high %v460_v25, %v464_v26  ;;  %v520_v18 = vld [vmem:[%s4743_s18 + $0x2b8] sm:$0xff] }
 0x16a   : > { %2112 = vmatmul.mubr.bf16.gmra.mrb[44].mxu1 %v3399_v35  ;;  %v3337_v35 = vcombine.low %v458_v23, %v462_v24  ;;  %v522_v23 = vld [vmem:[%s4743_s18 + $0x2c8] sm:$0xff] }
 0x16b   : > { %2498 = vmatmul.mubr.bf16.gmra.mrb[44].mxu0 %v3403_v36  ;;  %2121 = vmatprep.mubr.bf16.mxu1 %v3408_v37  ;;  %v3341_v36 = vcombine.low %v460_v25, %v464_v26  ;;  %v3346_v37 = vcombine.high %v466_v31, %v470_v32  ;;  %v526_v24 = vld [vmem:[%s4743_s18 + $0x2e8] sm:$0xff]  ;;  %v524_v25 = vld [vmem:[%s4743_s18 + $0x2d8] sm:$0xff] }
 0x16c   : > { %2507 = vmatprep.mubr.bf16.mxu0 %v3412_v38  ;;  %v3350_v38 = vcombine.high %v468_v33, %v472_v34  ;;  %v528_v26 = vld [vmem:[%s4743_s18 + $0x2f8] sm:$0xff] }
 0x172   : > { %2122 = vmatmul.mubr.bf16.gmra.mrb[48].mxu1 %v3407_v43  ;;  %v3345_v43 = vcombine.low %v466_v31, %v470_v32  ;;  %v530_v31 = vld [vmem:[%s4743_s18 + $0x308] sm:$0xff] }
 0x173   : > { %2508 = vmatmul.mubr.bf16.gmra.mrb[48].mxu0 %v3411_v44  ;;  %2131 = vmatprep.mubr.bf16.mxu1 %v3416_v45  ;;  %v3349_v44 = vcombine.low %v468_v33, %v472_v34  ;;  %v3354_v45 = vcombine.high %v474_v39, %v478_v40  ;;  %v534_v32 = vld [vmem:[%s4743_s18 + $0x328] sm:$0xff]  ;;  %v532_v33 = vld [vmem:[%s4743_s18 + $0x318] sm:$0xff] }
 0x174   : > { %2517 = vmatprep.mubr.bf16.mxu0 %v3420_v46  ;;  %v3358_v46 = vcombine.high %v476_v41, %v480_v42  ;;  %v536_v34 = vld [vmem:[%s4743_s18 + $0x338] sm:$0xff] }
 0x17a   : > { %2132 = vmatmul.mubr.bf16.gmra.mrb[52].mxu1 %v3415_v51  ;;  %v3353_v51 = vcombine.low %v474_v39, %v478_v40  ;;  %v538_v39 = vld [vmem:[%s4743_s18 + $0x348] sm:$0xff] }
 0x17b   : > { %2518 = vmatmul.mubr.bf16.gmra.mrb[52].mxu0 %v3419_v52  ;;  %2141 = vmatprep.mubr.bf16.mxu1 %v3424_v53  ;;  %v3357_v52 = vcombine.low %v476_v41, %v480_v42  ;;  %v3362_v53 = vcombine.high %v482_v47, %v486_v48  ;;  %v542_v40 = vld [vmem:[%s4743_s18 + $0x368] sm:$0xff]  ;;  %v540_v41 = vld [vmem:[%s4743_s18 + $0x358] sm:$0xff] }
 0x17c   : > { %2527 = vmatprep.mubr.bf16.mxu0 %v3428_v54  ;;  %v3366_v54 = vcombine.high %v484_v49, %v488_v50  ;;  %v544_v42 = vld [vmem:[%s4743_s18 + $0x378] sm:$0xff] }
 0x182   : > { %2142 = vmatmul.mubr.bf16.gmra.mrb[56].mxu1 %v3423_v59  ;;  %v3361_v59 = vcombine.low %v482_v47, %v486_v48  ;;  %v546_v47 = vld [vmem:[%s4743_s18 + $0x388] sm:$0xff] }
 0x183   : > { %2528 = vmatmul.mubr.bf16.gmra.mrb[56].mxu0 %v3427_v60  ;;  %2151 = vmatprep.mubr.bf16.mxu1 %v3432_v61  ;;  %v3365_v60 = vcombine.low %v484_v49, %v488_v50  ;;  %v3370_v61 = vcombine.high %v490_v55, %v494_v56  ;;  %v550_v48 = vld [vmem:[%s4743_s18 + $0x3a8] sm:$0xff]  ;;  %v548_v49 = vld [vmem:[%s4743_s18 + $0x398] sm:$0xff] }
 0x184   : > { %2537 = vmatprep.mubr.bf16.mxu0 %v3436_v62  ;;  %v3374_v62 = vcombine.high %v492_v57, %v496_v58  ;;  %v552_v50 = vld [vmem:[%s4743_s18 + $0x3b8] sm:$0xff] }
 0x18a   : > { %2152 = vmatmul.mubr.bf16.gmra.mrb[60].mxu1 %v3431_v3  ;;  %v3369_v3 = vcombine.low %v490_v55, %v494_v56  ;;  %v554_v55 = vld [vmem:[%s4743_s18 + $0x3c8] sm:$0xff] }
 0x18b   : > { %2538 = vmatmul.mubr.bf16.gmra.mrb[60].mxu0 %v3435_v4  ;;  %2194 = vmatprep.mubr.bf16.mxu1 %v3314_v5  ;;  %v3373_v4 = vcombine.low %v492_v57, %v496_v58  ;;  %v3378_v5 = vcombine.high %v498_v63, %v502_v0  ;;  %v558_v56 = vld [vmem:[%s4743_s18 + $0x3e8] sm:$0xff]  ;;  %v556_v57 = vld [vmem:[%s4743_s18 + $0x3d8] sm:$0xff] }
 0x18c   : > { %2580 = vmatprep.mubr.bf16.mxu0 %v3318_v6  ;;  %v3382_v6 = vcombine.high %v500_v1, %v504_v2  ;;  %v560_v58 = vld [vmem:[%s4743_s18 + $0x3f8] sm:$0xff] }
 0x192   : > { %2195 = vmatmul.mubr.bf16.vlgmr.msra.gmra.mrb[0].mxu1 %v3313_v11  ;;  %v3377_v11 = vcombine.low %v498_v63, %v502_v0  ;;  %v3433_v63 = vcombine.low %v554_v55, %v558_v56  ;;  %v3437_v0 = vcombine.low %v556_v57, %v560_v58 }
 0x193   : > { %2581 = vmatmul.mubr.bf16.vlgmr.msra.gmra.mrb[0].mxu0 %v3317_v12  ;;  %2204 = vmatprep.mubr.bf16.mxu1 %v3322_v13  ;;  %v3381_v12 = vcombine.low %v500_v1, %v504_v2  ;;  %v3386_v13 = vcombine.high %v506_v7, %v510_v8  ;;  %v369_v2 = vld [vmem:[#allocation2] sm:$0xff] }
 0x194   : > { %2590 = vmatprep.mubr.bf16.mxu0 %v3326_v14  ;;  %v3390_v14 = vcombine.high %v508_v9, %v512_v10 }
 0x19a   : > { %2205 = vmatmul.mubr.bf16.gmra.mrb[4].mxu1 %v3321_v19  ;;  %v3385_v19 = vcombine.low %v506_v7, %v510_v8 }
 0x19b   : > { %2591 = vmatmul.mubr.bf16.gmra.mrb[4].mxu0 %v3325_v20  ;;  %2214 = vmatprep.mubr.bf16.mxu1 %v3330_v21  ;;  %v3389_v20 = vcombine.low %v508_v9, %v512_v10  ;;  %v3394_v21 = vcombine.high %v514_v15, %v518_v16  ;;  %v371_v10 = vld [vmem:[#allocation2 + $0x10] sm:$0xff] }
 0x19c   : > { %2600 = vmatprep.mubr.bf16.mxu0 %v3334_v22  ;;  %v3398_v22 = vcombine.high %v516_v17, %v520_v18 }
 0x1a2   : > { %2215 = vmatmul.mubr.bf16.gmra.mrb[8].mxu1 %v3329_v27  ;;  %v3393_v27 = vcombine.low %v514_v15, %v518_v16  ;;  %v372_v15 = vld [vmem:[#allocation2 + $0x18] sm:$0xff] }
 0x1a3   : > { %2601 = vmatmul.mubr.bf16.gmra.mrb[8].mxu0 %v3333_v28  ;;  %2224 = vmatprep.mubr.bf16.mxu1 %v3338_v29  ;;  %v3397_v28 = vcombine.low %v516_v17, %v520_v18  ;;  %v3402_v29 = vcombine.high %v522_v23, %v526_v24 }
 0x1a4   : > { %2610 = vmatprep.mubr.bf16.mxu0 %v3342_v30  ;;  %v3406_v30 = vcombine.high %v524_v25, %v528_v26 }
 0x1aa   : > { %2225 = vmatmul.mubr.bf16.gmra.mrb[12].mxu1 %v3337_v35  ;;  %v3401_v35 = vcombine.low %v522_v23, %v526_v24 }
 0x1ab   : > { %2611 = vmatmul.mubr.bf16.gmra.mrb[12].mxu0 %v3341_v36  ;;  %2234 = vmatprep.mubr.bf16.mxu1 %v3346_v37  ;;  %v3405_v36 = vcombine.low %v524_v25, %v528_v26  ;;  %v3410_v37 = vcombine.high %v530_v31, %v534_v32  ;;  %v374_v26 = vld [vmem:[#allocation2 + $0x28] sm:$0xff] }
 0x1ac   : > { %2620 = vmatprep.mubr.bf16.mxu0 %v3350_v38  ;;  %v3414_v38 = vcombine.high %v532_v33, %v536_v34 }
 0x1b2   : > { %2235 = vmatmul.mubr.bf16.gmra.mrb[16].mxu1 %v3345_v43  ;;  %v3409_v43 = vcombine.low %v530_v31, %v534_v32 }
 0x1b3   : > { %2621 = vmatmul.mubr.bf16.gmra.mrb[16].mxu0 %v3349_v44  ;;  %2244 = vmatprep.mubr.bf16.mxu1 %v3354_v45  ;;  %v3413_v44 = vcombine.low %v532_v33, %v536_v34  ;;  %v3418_v45 = vcombine.high %v538_v39, %v542_v40 }
 0x1b4   : > { %2630 = vmatprep.mubr.bf16.mxu0 %v3358_v46  ;;  %v3422_v46 = vcombine.high %v540_v41, %v544_v42 }
 0x1ba   : > { %2245 = vmatmul.mubr.bf16.gmra.mrb[20].mxu1 %v3353_v51  ;;  %v3417_v51 = vcombine.low %v538_v39, %v542_v40 }
 0x1bb   : > { %2631 = vmatmul.mubr.bf16.gmra.mrb[20].mxu0 %v3357_v52  ;;  %2254 = vmatprep.mubr.bf16.mxu1 %v3362_v53  ;;  %v3421_v52 = vcombine.low %v540_v41, %v544_v42  ;;  %v3426_v53 = vcombine.high %v546_v47, %v550_v48  ;;  %v377_v42 = vld [vmem:[#allocation2 + $0x40] sm:$0xff] }
 0x1bc   : > { %2640 = vmatprep.mubr.bf16.mxu0 %v3366_v54  ;;  %v3430_v54 = vcombine.high %v548_v49, %v552_v50 }
 0x1c2   : > { %2255 = vmatmul.mubr.bf16.gmra.mrb[24].mxu1 %v3361_v59  ;;  %v3425_v59 = vcombine.low %v546_v47, %v550_v48 }
 0x1c3   : > { %2641 = vmatmul.mubr.bf16.gmra.mrb[24].mxu0 %v3365_v60  ;;  %2264 = vmatprep.mubr.bf16.mxu1 %v3370_v61  ;;  %v3429_v60 = vcombine.low %v548_v49, %v552_v50  ;;  %v3434_v61 = vcombine.high %v554_v55, %v558_v56  ;;  %v379_v50 = vld [vmem:[#allocation2 + $0x50] sm:$0xff]  ;;  %v380_v55 = vld [vmem:[#allocation2 + $0x58] sm:$0xff] }
 0x1c4   : > { %2650 = vmatprep.mubr.bf16.mxu0 %v3374_v62  ;;  %v3438_v62 = vcombine.high %v556_v57, %v560_v58 }
 0x1ca   : > { %2265 = vmatmul.mubr.bf16.gmra.mrb[28].mxu1 %v3369_v3 }
 0x1cb   : > { %2651 = vmatmul.mubr.bf16.gmra.mrb[28].mxu0 %v3373_v4  ;;  %2274 = vmatprep.mubr.bf16.mxu1 %v3378_v5 }
 0x1cc   : > { %2660 = vmatprep.mubr.bf16.mxu0 %v3382_v6  ;;  %v370_v6 = vld [vmem:[#allocation2 + $0x8] sm:$0xff] }
 0x1d2   : > { %2275 = vmatmul.mubr.bf16.gmra.mrb[32].mxu1 %v3377_v11 }
 0x1d3   : > { %2661 = vmatmul.mubr.bf16.gmra.mrb[32].mxu0 %v3381_v12  ;;  %2284 = vmatprep.mubr.bf16.mxu1 %v3386_v13 }
 0x1d4   : > { %2670 = vmatprep.mubr.bf16.mxu0 %v3390_v14 }
 0x1da   : > { %2285 = vmatmul.mubr.bf16.gmra.mrb[36].mxu1 %v3385_v19 }
 0x1db   : > { %2671 = vmatmul.mubr.bf16.gmra.mrb[36].mxu0 %v3389_v20  ;;  %2294 = vmatprep.mubr.bf16.mxu1 %v3394_v21 }
 0x1dc   : > { %2680 = vmatprep.mubr.bf16.mxu0 %v3398_v22  ;;  %v373_v22 = vld [vmem:[#allocation2 + $0x20] sm:$0xff] }
 0x1e2   : > { %2295 = vmatmul.mubr.bf16.gmra.mrb[40].mxu1 %v3393_v27 }
 0x1e3   : > { %2681 = vmatmul.mubr.bf16.gmra.mrb[40].mxu0 %v3397_v28  ;;  %2304 = vmatprep.mubr.bf16.mxu1 %v3402_v29 }
 0x1e4   : > { %2690 = vmatprep.mubr.bf16.mxu0 %v3406_v30  ;;  %v375_v30 = vld [vmem:[#allocation2 + $0x30] sm:$0xff] }
 0x1ea   : > { %2305 = vmatmul.mubr.bf16.gmra.mrb[44].mxu1 %v3401_v35  ;;  %v376_v35 = vld [vmem:[#allocation2 + $0x38] sm:$0xff] }
 0x1eb   : > { %2691 = vmatmul.mubr.bf16.gmra.mrb[44].mxu0 %v3405_v36  ;;  %2314 = vmatprep.mubr.bf16.mxu1 %v3410_v37 }
 0x1ec   : > { %2700 = vmatprep.mubr.bf16.mxu0 %v3414_v38 }
 0x1f2   : > { %2315 = vmatmul.mubr.bf16.gmra.mrb[48].mxu1 %v3409_v43 }
 0x1f3   : > { %2701 = vmatmul.mubr.bf16.gmra.mrb[48].mxu0 %v3413_v44  ;;  %2324 = vmatprep.mubr.bf16.mxu1 %v3418_v45 }
 0x1f4   : > { %2710 = vmatprep.mubr.bf16.mxu0 %v3422_v46  ;;  %v378_v46 = vld [vmem:[#allocation2 + $0x48] sm:$0xff] }
 0x1fa   : > { %2325 = vmatmul.mubr.bf16.gmra.mrb[52].mxu1 %v3417_v51 }
 0x1fb   : > { %2711 = vmatmul.mubr.bf16.gmra.mrb[52].mxu0 %v3421_v52  ;;  %2334 = vmatprep.mubr.bf16.mxu1 %v3426_v53 }
 0x1fc   : > { %2720 = vmatprep.mubr.bf16.mxu0 %v3430_v54 }
 0x202   : > { %2335 = vmatmul.mubr.bf16.gmra.mrb[56].mxu1 %v3425_v59 }
 0x203   : > { %2721 = vmatmul.mubr.bf16.gmra.mrb[56].mxu0 %v3429_v60  ;;  %2344 = vmatprep.mubr.bf16.mxu1 %v3434_v61 }
 0x204   : > { %2730 = vmatprep.mubr.bf16.mxu0 %v3438_v62  ;;  %v381_v62 = vld [vmem:[#allocation2 + $0x60] sm:$0xff] }
 0x20a   : > { %2345 = vmatmul.mubr.bf16.gmra.mrb[60].mxu1 %v3433_v63 }
 0x20b   : > { %2731 = vmatmul.mubr.bf16.gmra.mrb[60].mxu0 %v3437_v0 }
 0x265   : > { %v2196_v1 = vpop.f32.mrb[0].mxu1 }
 0x266   : > { %v2582_v3 = vpop.f32.mrb[0].mxu0  ;;  %v2198_v5 = vpop.f32.mrb[1].mxu1 }
 0x267   : > { %v3643_v4 = vadd.f32 %v2582_v3, %v2196_v1  ;;  %v2584_v7 = vpop.f32.mrb[1].mxu0  ;;  %v2200_v9 = vpop.f32.mrb[2].mxu1 }
 0x268   : > { %v3644_v8 = vadd.f32 %v2584_v7, %v2198_v5  ;;  %v2586_v11 = vpop.f32.mrb[2].mxu0  ;;  %v2202_v14 = vpop.f32.mrb[3].mxu1 }
 0x269   : > { %v2741_v12 = vadd.f32 %v3643_v4, %v369_v2  ;;  %v3645_v13 = vadd.f32 %v2586_v11, %v2200_v9  ;;  %v2588_v16 = vpop.f32.mrb[3].mxu0  ;;  %v382_v2 = vld [vmem:[#allocation2 + $0x68] sm:$0xff]  ;;  %v384_v11 = vld [vmem:[#allocation2 + $0x78] sm:$0xff] }
 0x26a   : > { %v2742_v17 = vadd.f32 %v3644_v8, %v370_v6  ;;  %v3646_v18 = vadd.f32 %v2588_v16, %v2202_v14  ;;  %v383_v6 = vld [vmem:[#allocation2 + $0x70] sm:$0xff] }
 0x26b   : > { %2805 = vst [vmem:[#allocation2] sm:$0xff] %v2741_v12  ;;  %v2743_v19 = vadd.f32 %v3645_v13, %v371_v10 }
 0x26c   : > { %2806 = vst [vmem:[#allocation2 + $0x8] sm:$0xff] %v2742_v17  ;;  %v2744_v20 = vadd.f32 %v3646_v18, %v372_v15  ;;  %v385_v18 = vld [vmem:[#allocation2 + $0x80] sm:$0xff] }
 0x26d   : > { %2807 = vst [vmem:[#allocation2 + $0x10] sm:$0xff] %v2743_v19  ;;  %v2206_v21 = vpop.f32.mrb[4].mxu1 }
 0x26e   : > { %2808 = vst [vmem:[#allocation2 + $0x18] sm:$0xff] %v2744_v20  ;;  %v2592_v23 = vpop.f32.mrb[4].mxu0  ;;  %v2208_v25 = vpop.f32.mrb[5].mxu1 }
 0x26f   : > { %v3647_v24 = vadd.f32 %v2592_v23, %v2206_v21  ;;  %v2594_v27 = vpop.f32.mrb[5].mxu0  ;;  %v2210_v29 = vpop.f32.mrb[6].mxu1 }
 0x270   : > { %v3648_v28 = vadd.f32 %v2594_v27, %v2208_v25  ;;  %v2596_v31 = vpop.f32.mrb[6].mxu0  ;;  %v2212_v34 = vpop.f32.mrb[7].mxu1 }
 0x271   : > { %v2745_v32 = vadd.f32 %v3647_v24, %v373_v22  ;;  %v3649_v33 = vadd.f32 %v2596_v31, %v2210_v29  ;;  %v2598_v36 = vpop.f32.mrb[7].mxu0  ;;  %v386_v22 = vld [vmem:[#allocation2 + $0x88] sm:$0xff]  ;;  %v388_v31 = vld [vmem:[#allocation2 + $0x98] sm:$0xff] }
 0x272   : > { %v2746_v37 = vadd.f32 %v3648_v28, %v374_v26  ;;  %v3650_v38 = vadd.f32 %v2598_v36, %v2212_v34  ;;  %v387_v26 = vld [vmem:[#allocation2 + $0x90] sm:$0xff] }
 0x273   : > { %2809 = vst [vmem:[#allocation2 + $0x20] sm:$0xff] %v2745_v32  ;;  %v2747_v39 = vadd.f32 %v3649_v33, %v375_v30 }
 0x274   : > { %2810 = vst [vmem:[#allocation2 + $0x28] sm:$0xff] %v2746_v37  ;;  %v2748_v40 = vadd.f32 %v3650_v38, %v376_v35  ;;  %v389_v38 = vld [vmem:[#allocation2 + $0xa0] sm:$0xff] }
 0x275   : > { %2811 = vst [vmem:[#allocation2 + $0x30] sm:$0xff] %v2747_v39  ;;  %v2216_v41 = vpop.f32.mrb[8].mxu1 }
 0x276   : > { %2812 = vst [vmem:[#allocation2 + $0x38] sm:$0xff] %v2748_v40  ;;  %v2602_v43 = vpop.f32.mrb[8].mxu0  ;;  %v2218_v45 = vpop.f32.mrb[9].mxu1 }
 0x277   : > { %v3651_v44 = vadd.f32 %v2602_v43, %v2216_v41  ;;  %v2604_v47 = vpop.f32.mrb[9].mxu0  ;;  %v2220_v49 = vpop.f32.mrb[10].mxu1 }
 0x278   : > { %v3652_v48 = vadd.f32 %v2604_v47, %v2218_v45  ;;  %v2606_v51 = vpop.f32.mrb[10].mxu0  ;;  %v2222_v54 = vpop.f32.mrb[11].mxu1 }
 0x279   : > { %v2749_v52 = vadd.f32 %v3651_v44, %v377_v42  ;;  %v3653_v53 = vadd.f32 %v2606_v51, %v2220_v49  ;;  %v2608_v56 = vpop.f32.mrb[11].mxu0  ;;  %v390_v42 = vld [vmem:[#allocation2 + $0xa8] sm:$0xff]  ;;  %v392_v51 = vld [vmem:[#allocation2 + $0xb8] sm:$0xff] }
 0x27a   : > { %v2750_v57 = vadd.f32 %v3652_v48, %v378_v46  ;;  %v3654_v58 = vadd.f32 %v2608_v56, %v2222_v54  ;;  %v391_v46 = vld [vmem:[#allocation2 + $0xb0] sm:$0xff] }
 0x27b   : > { %2813 = vst [vmem:[#allocation2 + $0x40] sm:$0xff] %v2749_v52  ;;  %v2751_v59 = vadd.f32 %v3653_v53, %v379_v50 }
 0x27c   : > { %2814 = vst [vmem:[#allocation2 + $0x48] sm:$0xff] %v2750_v57  ;;  %v2752_v60 = vadd.f32 %v3654_v58, %v380_v55  ;;  %v393_v58 = vld [vmem:[#allocation2 + $0xc0] sm:$0xff] }
 0x27d   : > { %2815 = vst [vmem:[#allocation2 + $0x50] sm:$0xff] %v2751_v59  ;;  %v2226_v61 = vpop.f32.mrb[12].mxu1 }
 0x27e   : > { %2816 = vst [vmem:[#allocation2 + $0x58] sm:$0xff] %v2752_v60  ;;  %v2612_v63 = vpop.f32.mrb[12].mxu0  ;;  %v2228_v1 = vpop.f32.mrb[13].mxu1 }
 0x27f   : > { %v3655_v0 = vadd.f32 %v2612_v63, %v2226_v61  ;;  %v2614_v3 = vpop.f32.mrb[13].mxu0  ;;  %v2230_v5 = vpop.f32.mrb[14].mxu1 }
 0x280   : > { %v3656_v4 = vadd.f32 %v2614_v3, %v2228_v1  ;;  %v2616_v7 = vpop.f32.mrb[14].mxu0  ;;  %v2232_v10 = vpop.f32.mrb[15].mxu1 }
 0x281   : > { %v2753_v8 = vadd.f32 %v3655_v0, %v381_v62  ;;  %v3657_v9 = vadd.f32 %v2616_v7, %v2230_v5  ;;  %v2618_v12 = vpop.f32.mrb[15].mxu0  ;;  %v394_v62 = vld [vmem:[#allocation2 + $0xc8] sm:$0xff]  ;;  %v396_v7 = vld [vmem:[#allocation2 + $0xd8] sm:$0xff] }
 0x282   : > { %v2754_v13 = vadd.f32 %v3656_v4, %v382_v2  ;;  %v3658_v14 = vadd.f32 %v2618_v12, %v2232_v10  ;;  %v395_v2 = vld [vmem:[#allocation2 + $0xd0] sm:$0xff] }
 0x283   : > { %2817 = vst [vmem:[#allocation2 + $0x60] sm:$0xff] %v2753_v8  ;;  %v2755_v15 = vadd.f32 %v3657_v9, %v383_v6 }
 0x284   : > { %2818 = vst [vmem:[#allocation2 + $0x68] sm:$0xff] %v2754_v13  ;;  %v2756_v16 = vadd.f32 %v3658_v14, %v384_v11  ;;  %v397_v14 = vld [vmem:[#allocation2 + $0xe0] sm:$0xff] }
 0x285   : > { %2819 = vst [vmem:[#allocation2 + $0x70] sm:$0xff] %v2755_v15  ;;  %v2236_v17 = vpop.f32.mrb[16].mxu1 }
 0x286   : > { %2820 = vst [vmem:[#allocation2 + $0x78] sm:$0xff] %v2756_v16  ;;  %v2622_v19 = vpop.f32.mrb[16].mxu0  ;;  %v2238_v21 = vpop.f32.mrb[17].mxu1 }
 0x287   : > { %v3659_v20 = vadd.f32 %v2622_v19, %v2236_v17  ;;  %v2624_v23 = vpop.f32.mrb[17].mxu0  ;;  %v2240_v25 = vpop.f32.mrb[18].mxu1 }
 0x288   : > { %v3660_v24 = vadd.f32 %v2624_v23, %v2238_v21  ;;  %v2626_v27 = vpop.f32.mrb[18].mxu0  ;;  %v2242_v30 = vpop.f32.mrb[19].mxu1 }
 0x289   : > { %v2757_v28 = vadd.f32 %v3659_v20, %v385_v18  ;;  %v3661_v29 = vadd.f32 %v2626_v27, %v2240_v25  ;;  %v2628_v32 = vpop.f32.mrb[19].mxu0  ;;  %v398_v18 = vld [vmem:[#allocation2 + $0xe8] sm:$0xff]  ;;  %v400_v27 = vld [vmem:[#allocation2 + $0xf8] sm:$0xff] }
 0x28a   : > { %v2758_v33 = vadd.f32 %v3660_v24, %v386_v22  ;;  %v3662_v34 = vadd.f32 %v2628_v32, %v2242_v30  ;;  %v399_v22 = vld [vmem:[#allocation2 + $0xf0] sm:$0xff] }
 0x28b   : > { %2821 = vst [vmem:[#allocation2 + $0x80] sm:$0xff] %v2757_v28  ;;  %v2759_v35 = vadd.f32 %v3661_v29, %v387_v26 }
 0x28c   : > { %2822 = vst [vmem:[#allocation2 + $0x88] sm:$0xff] %v2758_v33  ;;  %v2760_v36 = vadd.f32 %v3662_v34, %v388_v31  ;;  %v401_v34 = vld [vmem:[#allocation2 + $0x100] sm:$0xff] }
 0x28d   : > { %2823 = vst [vmem:[#allocation2 + $0x90] sm:$0xff] %v2759_v35  ;;  %v2246_v37 = vpop.f32.mrb[20].mxu1 }
 0x28e   : > { %2824 = vst [vmem:[#allocation2 + $0x98] sm:$0xff] %v2760_v36  ;;  %v2632_v39 = vpop.f32.mrb[20].mxu0  ;;  %v2248_v41 = vpop.f32.mrb[21].mxu1 }
 0x28f   : > { %v3663_v40 = vadd.f32 %v2632_v39, %v2246_v37  ;;  %v2634_v43 = vpop.f32.mrb[21].mxu0  ;;  %v2250_v45 = vpop.f32.mrb[22].mxu1 }
 0x290   : > { %v3664_v44 = vadd.f32 %v2634_v43, %v2248_v41  ;;  %v2636_v47 = vpop.f32.mrb[22].mxu0  ;;  %v2252_v50 = vpop.f32.mrb[23].mxu1 }
 0x291   : > { %v2761_v48 = vadd.f32 %v3663_v40, %v389_v38  ;;  %v3665_v49 = vadd.f32 %v2636_v47, %v2250_v45  ;;  %v2638_v52 = vpop.f32.mrb[23].mxu0  ;;  %v402_v38 = vld [vmem:[#allocation2 + $0x108] sm:$0xff]  ;;  %v404_v47 = vld [vmem:[#allocation2 + $0x118] sm:$0xff] }
 0x292   : > { %v2762_v53 = vadd.f32 %v3664_v44, %v390_v42  ;;  %v3666_v54 = vadd.f32 %v2638_v52, %v2252_v50  ;;  %v403_v42 = vld [vmem:[#allocation2 + $0x110] sm:$0xff] }
 0x293   : > { %2825 = vst [vmem:[#allocation2 + $0xa0] sm:$0xff] %v2761_v48  ;;  %v2763_v55 = vadd.f32 %v3665_v49, %v391_v46 }
 0x294   : > { %2826 = vst [vmem:[#allocation2 + $0xa8] sm:$0xff] %v2762_v53  ;;  %v2764_v56 = vadd.f32 %v3666_v54, %v392_v51  ;;  %v405_v54 = vld [vmem:[#allocation2 + $0x120] sm:$0xff] }
 0x295   : > { %2827 = vst [vmem:[#allocation2 + $0xb0] sm:$0xff] %v2763_v55  ;;  %v2256_v57 = vpop.f32.mrb[24].mxu1 }
 0x296   : > { %2828 = vst [vmem:[#allocation2 + $0xb8] sm:$0xff] %v2764_v56  ;;  %v2642_v59 = vpop.f32.mrb[24].mxu0  ;;  %v2258_v61 = vpop.f32.mrb[25].mxu1 }
 0x297   : > { %v3667_v60 = vadd.f32 %v2642_v59, %v2256_v57  ;;  %v2644_v63 = vpop.f32.mrb[25].mxu0  ;;  %v2260_v1 = vpop.f32.mrb[26].mxu1 }
 0x298   : > { %v3668_v0 = vadd.f32 %v2644_v63, %v2258_v61  ;;  %v2646_v3 = vpop.f32.mrb[26].mxu0  ;;  %v2262_v6 = vpop.f32.mrb[27].mxu1 }
 0x299   : > { %v2765_v4 = vadd.f32 %v3667_v60, %v393_v58  ;;  %v3669_v5 = vadd.f32 %v2646_v3, %v2260_v1  ;;  %v2648_v8 = vpop.f32.mrb[27].mxu0  ;;  %v406_v58 = vld [vmem:[#allocation2 + $0x128] sm:$0xff]  ;;  %v408_v3 = vld [vmem:[#allocation2 + $0x138] sm:$0xff] }
 0x29a   : > { %v2766_v9 = vadd.f32 %v3668_v0, %v394_v62  ;;  %v3670_v10 = vadd.f32 %v2648_v8, %v2262_v6  ;;  %v407_v62 = vld [vmem:[#allocation2 + $0x130] sm:$0xff] }
 0x29b   : > { %2829 = vst [vmem:[#allocation2 + $0xc0] sm:$0xff] %v2765_v4  ;;  %v2767_v11 = vadd.f32 %v3669_v5, %v395_v2 }
 0x29c   : > { %2830 = vst [vmem:[#allocation2 + $0xc8] sm:$0xff] %v2766_v9  ;;  %v2768_v12 = vadd.f32 %v3670_v10, %v396_v7  ;;  %v409_v10 = vld [vmem:[#allocation2 + $0x140] sm:$0xff] }
 0x29d   : > { %2831 = vst [vmem:[#allocation2 + $0xd0] sm:$0xff] %v2767_v11  ;;  %v2266_v13 = vpop.f32.mrb[28].mxu1 }
 0x29e   : > { %2832 = vst [vmem:[#allocation2 + $0xd8] sm:$0xff] %v2768_v12  ;;  %v2652_v15 = vpop.f32.mrb[28].mxu0  ;;  %v2268_v17 = vpop.f32.mrb[29].mxu1 }
 0x29f   : > { %v3671_v16 = vadd.f32 %v2652_v15, %v2266_v13  ;;  %v2654_v19 = vpop.f32.mrb[29].mxu0  ;;  %v2270_v21 = vpop.f32.mrb[30].mxu1 }
 0x2a0   : > { %v3672_v20 = vadd.f32 %v2654_v19, %v2268_v17  ;;  %v2656_v23 = vpop.f32.mrb[30].mxu0  ;;  %v2272_v26 = vpop.f32.mrb[31].mxu1 }
 0x2a1   : > { %v2769_v24 = vadd.f32 %v3671_v16, %v397_v14  ;;  %v3673_v25 = vadd.f32 %v2656_v23, %v2270_v21  ;;  %v2658_v28 = vpop.f32.mrb[31].mxu0  ;;  %v410_v14 = vld [vmem:[#allocation2 + $0x148] sm:$0xff]  ;;  %v412_v23 = vld [vmem:[#allocation2 + $0x158] sm:$0xff] }
 0x2a2   : > { %v2770_v29 = vadd.f32 %v3672_v20, %v398_v18  ;;  %v3674_v30 = vadd.f32 %v2658_v28, %v2272_v26  ;;  %v411_v18 = vld [vmem:[#allocation2 + $0x150] sm:$0xff] }
 0x2a3   : > { %2833 = vst [vmem:[#allocation2 + $0xe0] sm:$0xff] %v2769_v24  ;;  %v2771_v31 = vadd.f32 %v3673_v25, %v399_v22 }
 0x2a4   : > { %2834 = vst [vmem:[#allocation2 + $0xe8] sm:$0xff] %v2770_v29  ;;  %v2772_v32 = vadd.f32 %v3674_v30, %v400_v27  ;;  %v413_v30 = vld [vmem:[#allocation2 + $0x160] sm:$0xff] }
 0x2a5   : > { %2835 = vst [vmem:[#allocation2 + $0xf0] sm:$0xff] %v2771_v31  ;;  %v2276_v33 = vpop.f32.mrb[32].mxu1 }
 0x2a6   : > { %2836 = vst [vmem:[#allocation2 + $0xf8] sm:$0xff] %v2772_v32  ;;  %v2662_v35 = vpop.f32.mrb[32].mxu0  ;;  %v2278_v37 = vpop.f32.mrb[33].mxu1 }
 0x2a7   : > { %v3675_v36 = vadd.f32 %v2662_v35, %v2276_v33  ;;  %v2664_v39 = vpop.f32.mrb[33].mxu0  ;;  %v2280_v41 = vpop.f32.mrb[34].mxu1 }
 0x2a8   : > { %v3676_v40 = vadd.f32 %v2664_v39, %v2278_v37  ;;  %v2666_v43 = vpop.f32.mrb[34].mxu0  ;;  %v2282_v46 = vpop.f32.mrb[35].mxu1 }
 0x2a9   : > { %v2773_v44 = vadd.f32 %v3675_v36, %v401_v34  ;;  %v3677_v45 = vadd.f32 %v2666_v43, %v2280_v41  ;;  %v2668_v48 = vpop.f32.mrb[35].mxu0  ;;  %v414_v34 = vld [vmem:[#allocation2 + $0x168] sm:$0xff]  ;;  %v416_v43 = vld [vmem:[#allocation2 + $0x178] sm:$0xff] }
 0x2aa   : > { %v2774_v49 = vadd.f32 %v3676_v40, %v402_v38  ;;  %v3678_v50 = vadd.f32 %v2668_v48, %v2282_v46  ;;  %v415_v38 = vld [vmem:[#allocation2 + $0x170] sm:$0xff] }
 0x2ab   : > { %2837 = vst [vmem:[#allocation2 + $0x100] sm:$0xff] %v2773_v44  ;;  %v2775_v51 = vadd.f32 %v3677_v45, %v403_v42 }
 0x2ac   : > { %2838 = vst [vmem:[#allocation2 + $0x108] sm:$0xff] %v2774_v49  ;;  %v2776_v52 = vadd.f32 %v3678_v50, %v404_v47  ;;  %v417_v50 = vld [vmem:[#allocation2 + $0x180] sm:$0xff] }
 0x2ad   : > { %2839 = vst [vmem:[#allocation2 + $0x110] sm:$0xff] %v2775_v51  ;;  %v2286_v53 = vpop.f32.mrb[36].mxu1 }
 0x2ae   : > { %2840 = vst [vmem:[#allocation2 + $0x118] sm:$0xff] %v2776_v52  ;;  %v2672_v55 = vpop.f32.mrb[36].mxu0  ;;  %v2288_v57 = vpop.f32.mrb[37].mxu1 }
 0x2af   : > { %v3679_v56 = vadd.f32 %v2672_v55, %v2286_v53  ;;  %v2674_v59 = vpop.f32.mrb[37].mxu0  ;;  %v2290_v61 = vpop.f32.mrb[38].mxu1 }
 0x2b0   : > { %v3680_v60 = vadd.f32 %v2674_v59, %v2288_v57  ;;  %v2676_v63 = vpop.f32.mrb[38].mxu0  ;;  %v2292_v2 = vpop.f32.mrb[39].mxu1 }
 0x2b1   : > { %v2777_v0 = vadd.f32 %v3679_v56, %v405_v54  ;;  %v3681_v1 = vadd.f32 %v2676_v63, %v2290_v61  ;;  %v2678_v4 = vpop.f32.mrb[39].mxu0  ;;  %v418_v54 = vld [vmem:[#allocation2 + $0x188] sm:$0xff]  ;;  %v420_v63 = vld [vmem:[#allocation2 + $0x198] sm:$0xff] }
 0x2b2   : > { %v2778_v5 = vadd.f32 %v3680_v60, %v406_v58  ;;  %v3682_v6 = vadd.f32 %v2678_v4, %v2292_v2  ;;  %v419_v58 = vld [vmem:[#allocation2 + $0x190] sm:$0xff] }
 0x2b3   : > { %2841 = vst [vmem:[#allocation2 + $0x120] sm:$0xff] %v2777_v0  ;;  %v2779_v7 = vadd.f32 %v3681_v1, %v407_v62 }
 0x2b4   : > { %2842 = vst [vmem:[#allocation2 + $0x128] sm:$0xff] %v2778_v5  ;;  %v2780_v8 = vadd.f32 %v3682_v6, %v408_v3  ;;  %v421_v6 = vld [vmem:[#allocation2 + $0x1a0] sm:$0xff] }
 0x2b5   : > { %2843 = vst [vmem:[#allocation2 + $0x130] sm:$0xff] %v2779_v7  ;;  %v2296_v9 = vpop.f32.mrb[40].mxu1 }
 0x2b6   : > { %2844 = vst [vmem:[#allocation2 + $0x138] sm:$0xff] %v2780_v8  ;;  %v2682_v11 = vpop.f32.mrb[40].mxu0  ;;  %v2298_v13 = vpop.f32.mrb[41].mxu1 }
 0x2b7   : > { %v3683_v12 = vadd.f32 %v2682_v11, %v2296_v9  ;;  %v2684_v15 = vpop.f32.mrb[41].mxu0  ;;  %v2300_v17 = vpop.f32.mrb[42].mxu1 }
 0x2b8   : > { %v3684_v16 = vadd.f32 %v2684_v15, %v2298_v13  ;;  %v2686_v19 = vpop.f32.mrb[42].mxu0  ;;  %v2302_v22 = vpop.f32.mrb[43].mxu1 }
 0x2b9   : > { %v2781_v20 = vadd.f32 %v3683_v12, %v409_v10  ;;  %v3685_v21 = vadd.f32 %v2686_v19, %v2300_v17  ;;  %v2688_v24 = vpop.f32.mrb[43].mxu0  ;;  %v422_v10 = vld [vmem:[#allocation2 + $0x1a8] sm:$0xff]  ;;  %v424_v19 = vld [vmem:[#allocation2 + $0x1b8] sm:$0xff] }
 0x2ba   : > { %v2782_v25 = vadd.f32 %v3684_v16, %v410_v14  ;;  %v3686_v26 = vadd.f32 %v2688_v24, %v2302_v22  ;;  %v423_v14 = vld [vmem:[#allocation2 + $0x1b0] sm:$0xff] }
 0x2bb   : > { %2845 = vst [vmem:[#allocation2 + $0x140] sm:$0xff] %v2781_v20  ;;  %v2783_v27 = vadd.f32 %v3685_v21, %v411_v18 }
 0x2bc   : > { %2846 = vst [vmem:[#allocation2 + $0x148] sm:$0xff] %v2782_v25  ;;  %v2784_v28 = vadd.f32 %v3686_v26, %v412_v23  ;;  %v425_v26 = vld [vmem:[#allocation2 + $0x1c0] sm:$0xff] }
 0x2bd   : > { %2847 = vst [vmem:[#allocation2 + $0x150] sm:$0xff] %v2783_v27  ;;  %v2306_v29 = vpop.f32.mrb[44].mxu1 }
 0x2be   : > { %2848 = vst [vmem:[#allocation2 + $0x158] sm:$0xff] %v2784_v28  ;;  %v2692_v31 = vpop.f32.mrb[44].mxu0  ;;  %v2308_v33 = vpop.f32.mrb[45].mxu1 }
 0x2bf   : > { %v3687_v32 = vadd.f32 %v2692_v31, %v2306_v29  ;;  %v2694_v35 = vpop.f32.mrb[45].mxu0  ;;  %v2310_v37 = vpop.f32.mrb[46].mxu1 }
 0x2c0   : > { %v3688_v36 = vadd.f32 %v2694_v35, %v2308_v33  ;;  %v2696_v39 = vpop.f32.mrb[46].mxu0  ;;  %v2312_v42 = vpop.f32.mrb[47].mxu1 }
 0x2c1   : > { %v2785_v40 = vadd.f32 %v3687_v32, %v413_v30  ;;  %v3689_v41 = vadd.f32 %v2696_v39, %v2310_v37  ;;  %v2698_v44 = vpop.f32.mrb[47].mxu0  ;;  %v426_v30 = vld [vmem:[#allocation2 + $0x1c8] sm:$0xff]  ;;  %v428_v39 = vld [vmem:[#allocation2 + $0x1d8] sm:$0xff] }
 0x2c2   : > { %v2786_v45 = vadd.f32 %v3688_v36, %v414_v34  ;;  %v3690_v46 = vadd.f32 %v2698_v44, %v2312_v42  ;;  %v427_v34 = vld [vmem:[#allocation2 + $0x1d0] sm:$0xff] }
 0x2c3   : > { %2849 = vst [vmem:[#allocation2 + $0x160] sm:$0xff] %v2785_v40  ;;  %v2787_v47 = vadd.f32 %v3689_v41, %v415_v38 }
 0x2c4   : > { %2850 = vst [vmem:[#allocation2 + $0x168] sm:$0xff] %v2786_v45  ;;  %v2788_v48 = vadd.f32 %v3690_v46, %v416_v43  ;;  %v429_v46 = vld [vmem:[#allocation2 + $0x1e0] sm:$0xff] }
 0x2c5   : > { %2851 = vst [vmem:[#allocation2 + $0x170] sm:$0xff] %v2787_v47  ;;  %v2316_v49 = vpop.f32.mrb[48].mxu1 }
 0x2c6   : > { %2852 = vst [vmem:[#allocation2 + $0x178] sm:$0xff] %v2788_v48  ;;  %v2702_v51 = vpop.f32.mrb[48].mxu0  ;;  %v2318_v53 = vpop.f32.mrb[49].mxu1 }
 0x2c7   : > { %v3691_v52 = vadd.f32 %v2702_v51, %v2316_v49  ;;  %v2704_v55 = vpop.f32.mrb[49].mxu0  ;;  %v2320_v57 = vpop.f32.mrb[50].mxu1 }
 0x2c8   : > { %v3692_v56 = vadd.f32 %v2704_v55, %v2318_v53  ;;  %v2706_v59 = vpop.f32.mrb[50].mxu0  ;;  %v2322_v62 = vpop.f32.mrb[51].mxu1 }
 0x2c9   : > { %v2789_v60 = vadd.f32 %v3691_v52, %v417_v50  ;;  %v3693_v61 = vadd.f32 %v2706_v59, %v2320_v57  ;;  %v2708_v0 = vpop.f32.mrb[51].mxu0  ;;  %v430_v50 = vld [vmem:[#allocation2 + $0x1e8] sm:$0xff]  ;;  %v432_v59 = vld [vmem:[#allocation2 + $0x1f8] sm:$0xff] }
 0x2ca   : > { %v2790_v1 = vadd.f32 %v3692_v56, %v418_v54  ;;  %v3694_v2 = vadd.f32 %v2708_v0, %v2322_v62  ;;  %v431_v54 = vld [vmem:[#allocation2 + $0x1f0] sm:$0xff] }
 0x2cb   : > { %2853 = vst [vmem:[#allocation2 + $0x180] sm:$0xff] %v2789_v60  ;;  %v2791_v3 = vadd.f32 %v3693_v61, %v419_v58 }
 0x2cc   : > { %2854 = vst [vmem:[#allocation2 + $0x188] sm:$0xff] %v2790_v1  ;;  %v2792_v4 = vadd.f32 %v3694_v2, %v420_v63 }
 0x2cd   : > { %2855 = vst [vmem:[#allocation2 + $0x190] sm:$0xff] %v2791_v3  ;;  %v2326_v5 = vpop.f32.mrb[52].mxu1 }
 0x2ce   : > { %2856 = vst [vmem:[#allocation2 + $0x198] sm:$0xff] %v2792_v4  ;;  %v2712_v7 = vpop.f32.mrb[52].mxu0  ;;  %v2328_v9 = vpop.f32.mrb[53].mxu1 }
 0x2cf   : > { %v3695_v8 = vadd.f32 %v2712_v7, %v2326_v5  ;;  %v2714_v11 = vpop.f32.mrb[53].mxu0  ;;  %v2330_v13 = vpop.f32.mrb[54].mxu1 }
 0x2d0   : > { %v3696_v12 = vadd.f32 %v2714_v11, %v2328_v9  ;;  %v2716_v15 = vpop.f32.mrb[54].mxu0  ;;  %v2332_v18 = vpop.f32.mrb[55].mxu1 }
 0x2d1   : > { %v2793_v16 = vadd.f32 %v3695_v8, %v421_v6  ;;  %v3697_v17 = vadd.f32 %v2716_v15, %v2330_v13  ;;  %v2718_v20 = vpop.f32.mrb[55].mxu0 }
 0x2d2   : > { %v2794_v21 = vadd.f32 %v3696_v12, %v422_v10  ;;  %v3698_v22 = vadd.f32 %v2718_v20, %v2332_v18 }
 0x2d3   : > { %2857 = vst [vmem:[#allocation2 + $0x1a0] sm:$0xff] %v2793_v16  ;;  %v2795_v23 = vadd.f32 %v3697_v17, %v423_v14 }
 0x2d4   : > { %2858 = vst [vmem:[#allocation2 + $0x1a8] sm:$0xff] %v2794_v21  ;;  %v2796_v24 = vadd.f32 %v3698_v22, %v424_v19 }
 0x2d5   : > { %2859 = vst [vmem:[#allocation2 + $0x1b0] sm:$0xff] %v2795_v23  ;;  %v2336_v25 = vpop.f32.mrb[56].mxu1 }
 0x2d6   : > { %2860 = vst [vmem:[#allocation2 + $0x1b8] sm:$0xff] %v2796_v24  ;;  %v2722_v27 = vpop.f32.mrb[56].mxu0  ;;  %v2338_v29 = vpop.f32.mrb[57].mxu1 }
 0x2d7   : > { %v3699_v28 = vadd.f32 %v2722_v27, %v2336_v25  ;;  %v2724_v31 = vpop.f32.mrb[57].mxu0  ;;  %v2340_v33 = vpop.f32.mrb[58].mxu1 }
 0x2d8   : > { %v3700_v32 = vadd.f32 %v2724_v31, %v2338_v29  ;;  %v2726_v35 = vpop.f32.mrb[58].mxu0  ;;  %v2342_v38 = vpop.f32.mrb[59].mxu1 }
 0x2d9   : > { %v2797_v36 = vadd.f32 %v3699_v28, %v425_v26  ;;  %v3701_v37 = vadd.f32 %v2726_v35, %v2340_v33  ;;  %v2728_v40 = vpop.f32.mrb[59].mxu0 }
 0x2da   : > { %v2798_v41 = vadd.f32 %v3700_v32, %v426_v30  ;;  %v3702_v42 = vadd.f32 %v2728_v40, %v2342_v38 }
 0x2db   : > { %2861 = vst [vmem:[#allocation2 + $0x1c0] sm:$0xff] %v2797_v36  ;;  %v2799_v43 = vadd.f32 %v3701_v37, %v427_v34 }
 0x2dc   : > { %2862 = vst [vmem:[#allocation2 + $0x1c8] sm:$0xff] %v2798_v41  ;;  %v2800_v44 = vadd.f32 %v3702_v42, %v428_v39 }
 0x2dd   : > { %2863 = vst [vmem:[#allocation2 + $0x1d0] sm:$0xff] %v2799_v43  ;;  %v2346_v45 = vpop.f32.mrb[60].mxu1 }
 0x2de   : > { %2864 = vst [vmem:[#allocation2 + $0x1d8] sm:$0xff] %v2800_v44  ;;  %v2732_v47 = vpop.f32.mrb[60].mxu0  ;;  %v2348_v49 = vpop.f32.mrb[61].mxu1 }
 0x2df   : > { %v3703_v48 = vadd.f32 %v2732_v47, %v2346_v45  ;;  %v2734_v51 = vpop.f32.mrb[61].mxu0  ;;  %v2350_v53 = vpop.f32.mrb[62].mxu1 }
 0x2e0   : > { %v3704_v52 = vadd.f32 %v2734_v51, %v2348_v49  ;;  %v2736_v55 = vpop.f32.mrb[62].mxu0  ;;  %v2352_v58 = vpop.f32.mrb[63].mxu1 }
 0x2e1   : > { %v2801_v56 = vadd.f32 %v3703_v48, %v429_v46  ;;  %v3705_v57 = vadd.f32 %v2736_v55, %v2350_v53  ;;  %v2738_v60 = vpop.f32.mrb[63].mxu0 }
 0x2e2   : > { %v2802_v61 = vadd.f32 %v3704_v52, %v430_v50  ;;  %v3706_v62 = vadd.f32 %v2738_v60, %v2352_v58 }
 0x2e3   : > { %2865 = vst [vmem:[#allocation2 + $0x1e0] sm:$0xff] %v2801_v56  ;;  %v2803_v63 = vadd.f32 %v3705_v57, %v431_v54 }
 0x2e4   : > { %2866 = vst [vmem:[#allocation2 + $0x1e8] sm:$0xff] %v2802_v61  ;;  %v2804_v0 = vadd.f32 %v3706_v62, %v432_v59 }
 0x2e5   : > { %2867 = vst [vmem:[#allocation2 + $0x1f0] sm:$0xff] %v2803_v63 }
 0x2e6   : > { %2868 = vst [vmem:[#allocation2 + $0x1f8] sm:$0xff] %v2804_v0 }
 0x2e7 PF: > { %s5262_s2 = sld [smem:[#allocation20_spill]] }
 0x2ed   : > { %p3567_p13 = scmp.ne.s32.totalorder %s5262_s2, 3 }
 0x2ee   : > { %v2873_v1 = vld [vmem:[#allocation2] sm:$0xff] (!%p3567_p13)  ;;  %v2874_v2 = vld [vmem:[#allocation2 + $0x8] sm:$0xff] (!%p3567_p13)  ;;  %v2875_v3 = vld [vmem:[#allocation2 + $0x10] sm:$0xff] (!%p3567_p13) }
 0x2ef   : > { %2872 = sbr.rel (%p3567_p13) target bundleno = 777 (0x309), region = 48  ;;  %v3609_v4 = vpack.c.bf16 (!%p3567_p13), %v2874_v2, %v2873_v1  ;;  %v2876_v5 = vld [vmem:[#allocation2 + $0x18] sm:$0xff] (!%p3567_p13)  ;;  %v2877_v6 = vld [vmem:[#allocation2 + $0x20] sm:$0xff] (!%p3567_p13)  ;;  %v2878_v7 = vld [vmem:[#allocation2 + $0x28] sm:$0xff] (!%p3567_p13) }
 0x2f0   : > { %v3610_v8 = vpack.c.bf16 (!%p3567_p13), %v2876_v5, %v2875_v3  ;;  %v3611_v9 = vpack.c.bf16 (!%p3567_p13), %v2878_v7, %v2877_v6  ;;  %v2879_v10 = vld [vmem:[#allocation2 + $0x30] sm:$0xff] (!%p3567_p13)  ;;  %v2880_v11 = vld [vmem:[#allocation2 + $0x38] sm:$0xff] (!%p3567_p13)  ;;  %v2881_v12 = vld [vmem:[#allocation2 + $0x40] sm:$0xff] (!%p3567_p13) }
 0x2f1   : > { %3129 = vst [vmem:[%s4759_s4] sm:$0xff] (!%p3567_p13), %v3609_v4  ;;  %v3612_v13 = vpack.c.bf16 (!%p3567_p13), %v2880_v11, %v2879_v10  ;;  %v2882_v14 = vld [vmem:[#allocation2 + $0x48] sm:$0xff] (!%p3567_p13)  ;;  %v2883_v15 = vld [vmem:[#allocation2 + $0x50] sm:$0xff] (!%p3567_p13)  ;;  %v2884_v16 = vld [vmem:[#allocation2 + $0x58] sm:$0xff] (!%p3567_p13) }
 0x2f2   : > { %3130 = vst [vmem:[%s4759_s4 + $0x8] sm:$0xff] (!%p3567_p13), %v3610_v8  ;;  %3131 = vst [vmem:[%s4759_s4 + $0x10] sm:$0xff] (!%p3567_p13), %v3611_v9  ;;  %v3613_v17 = vpack.c.bf16 (!%p3567_p13), %v2882_v14, %v2881_v12  ;;  %v3614_v18 = vpack.c.bf16 (!%p3567_p13), %v2884_v16, %v2883_v15  ;;  %v2885_v19 = vld [vmem:[#allocation2 + $0x60] sm:$0xff] (!%p3567_p13)  ;;  %v2886_v20 = vld [vmem:[#allocation2 + $0x68] sm:$0xff] (!%p3567_p13) }
 0x2f3   : > { %v2887_v21 = vld [vmem:[#allocation2 + $0x70] sm:$0xff] (!%p3567_p13)  ;;  %3132 = vst [vmem:[%s4759_s4 + $0x18] sm:$0xff] (!%p3567_p13), %v3612_v13  ;;  %v3615_v22 = vpack.c.bf16 (!%p3567_p13), %v2886_v20, %v2885_v19  ;;  %v2888_v23 = vld [vmem:[#allocation2 + $0x78] sm:$0xff] (!%p3567_p13)  ;;  %v2889_v24 = vld [vmem:[#allocation2 + $0x80] sm:$0xff] (!%p3567_p13) }
 0x2f4   : > { %v2890_v25 = vld [vmem:[#allocation2 + $0x88] sm:$0xff] (!%p3567_p13)  ;;  %3133 = vst [vmem:[%s4759_s4 + $0x20] sm:$0xff] (!%p3567_p13), %v3613_v17  ;;  %3134 = vst [vmem:[%s4759_s4 + $0x28] sm:$0xff] (!%p3567_p13), %v3614_v18  ;;  %v3616_v26 = vpack.c.bf16 (!%p3567_p13), %v2888_v23, %v2887_v21  ;;  %v2891_v28 = vld [vmem:[#allocation2 + $0x90] sm:$0xff] (!%p3567_p13) }
 0x2f5   : > { %v3617_v27 = vpack.c.bf16 (!%p3567_p13), %v2890_v25, %v2889_v24  ;;  %v2892_v29 = vld [vmem:[#allocation2 + $0x98] sm:$0xff] (!%p3567_p13)  ;;  %v2893_v30 = vld [vmem:[#allocation2 + $0xa0] sm:$0xff] (!%p3567_p13)  ;;  %3135 = vst [vmem:[%s4759_s4 + $0x30] sm:$0xff] (!%p3567_p13), %v3615_v22  ;;  %v2894_v32 = vld [vmem:[#allocation2 + $0xa8] sm:$0xff] (!%p3567_p13) }
 0x2f6   : > { %v3618_v31 = vpack.c.bf16 %v2892_v29, %v2891_v28  ;;  %v2895_v33 = vld [vmem:[#allocation2 + $0xb0] sm:$0xff]  ;;  %v2896_v34 = vld [vmem:[#allocation2 + $0xb8] sm:$0xff]  ;;  %3136 = vst [vmem:[%s4759_s4 + $0x38] sm:$0xff] %v3616_v26  ;;  %v3619_v35 = vpack.c.bf16 %v2894_v32, %v2893_v30  ;;  %v2897_v37 = vld [vmem:[#allocation2 + $0xc0] sm:$0xff] }
 0x2f7   : > { %3137 = vst [vmem:[%s4759_s4 + $0x40] sm:$0xff] %v3617_v27  ;;  %v3620_v36 = vpack.c.bf16 %v2896_v34, %v2895_v33  ;;  %v2898_v38 = vld [vmem:[#allocation2 + $0xc8] sm:$0xff]  ;;  %v2899_v39 = vld [vmem:[#allocation2 + $0xd0] sm:$0xff]  ;;  %v2900_v41 = vld [vmem:[#allocation2 + $0xd8] sm:$0xff] }
 0x2f8   : > { %3138 = vst [vmem:[%s4759_s4 + $0x48] sm:$0xff] %v3618_v31  ;;  %v3621_v40 = vpack.c.bf16 %v2898_v38, %v2897_v37  ;;  %v2901_v42 = vld [vmem:[#allocation2 + $0xe0] sm:$0xff]  ;;  %v2902_v43 = vld [vmem:[#allocation2 + $0xe8] sm:$0xff]  ;;  %3139 = vst [vmem:[%s4759_s4 + $0x50] sm:$0xff] %v3619_v35  ;;  %v3622_v44 = vpack.c.bf16 %v2900_v41, %v2899_v39 }
 0x2f9   : > { %3140 = vst [vmem:[%s4759_s4 + $0x58] sm:$0xff] %v3620_v36  ;;  %v3623_v45 = vpack.c.bf16 %v2902_v43, %v2901_v42  ;;  %v2903_v46 = vld [vmem:[#allocation2 + $0xf0] sm:$0xff]  ;;  %v2904_v47 = vld [vmem:[#allocation2 + $0xf8] sm:$0xff]  ;;  %v2905_v48 = vld [vmem:[#allocation2 + $0x100] sm:$0xff] }
 0x2fa   : > { %3141 = vst [vmem:[%s4759_s4 + $0x60] sm:$0xff] %v3621_v40  ;;  %v3624_v49 = vpack.c.bf16 %v2904_v47, %v2903_v46  ;;  %v2906_v50 = vld [vmem:[#allocation2 + $0x108] sm:$0xff]  ;;  %v2907_v51 = vld [vmem:[#allocation2 + $0x110] sm:$0xff]  ;;  %v2908_v52 = vld [vmem:[#allocation2 + $0x118] sm:$0xff] }
 0x2fb   : > { %3142 = vst [vmem:[%s4759_s4 + $0x68] sm:$0xff] %v3622_v44  ;;  %3143 = vst [vmem:[%s4759_s4 + $0x70] sm:$0xff] %v3623_v45  ;;  %v3625_v53 = vpack.c.bf16 %v2906_v50, %v2905_v48  ;;  %v3626_v54 = vpack.c.bf16 %v2908_v52, %v2907_v51  ;;  %v2909_v55 = vld [vmem:[#allocation2 + $0x120] sm:$0xff]  ;;  %v2910_v56 = vld [vmem:[#allocation2 + $0x128] sm:$0xff] }
 0x2fc   : > { %v2911_v57 = vld [vmem:[#allocation2 + $0x130] sm:$0xff]  ;;  %3144 = vst [vmem:[%s4759_s4 + $0x78] sm:$0xff] %v3624_v49  ;;  %v3627_v58 = vpack.c.bf16 %v2910_v56, %v2909_v55  ;;  %v2912_v59 = vld [vmem:[#allocation2 + $0x138] sm:$0xff]  ;;  %v2913_v60 = vld [vmem:[#allocation2 + $0x140] sm:$0xff] }
 0x2fd   : > { %v2914_v61 = vld [vmem:[#allocation2 + $0x148] sm:$0xff]  ;;  %3145 = vst [vmem:[%s4759_s4 + $0x80] sm:$0xff] %v3625_v53  ;;  %3146 = vst [vmem:[%s4759_s4 + $0x88] sm:$0xff] %v3626_v54  ;;  %v3628_v62 = vpack.c.bf16 %v2912_v59, %v2911_v57  ;;  %v2915_v0 = vld [vmem:[#allocation2 + $0x150] sm:$0xff] }
 0x2fe   : > { %v3629_v63 = vpack.c.bf16 %v2914_v61, %v2913_v60  ;;  %v2916_v1 = vld [vmem:[#allocation2 + $0x158] sm:$0xff]  ;;  %v2917_v2 = vld [vmem:[#allocation2 + $0x160] sm:$0xff]  ;;  %3147 = vst [vmem:[%s4759_s4 + $0x90] sm:$0xff] %v3627_v58  ;;  %v2918_v4 = vld [vmem:[#allocation2 + $0x168] sm:$0xff] }
 0x2ff   : > { %v3630_v3 = vpack.c.bf16 %v2916_v1, %v2915_v0  ;;  %v2919_v5 = vld [vmem:[#allocation2 + $0x170] sm:$0xff]  ;;  %v2920_v6 = vld [vmem:[#allocation2 + $0x178] sm:$0xff]  ;;  %3148 = vst [vmem:[%s4759_s4 + $0x98] sm:$0xff] %v3628_v62  ;;  %v3631_v7 = vpack.c.bf16 %v2918_v4, %v2917_v2  ;;  %v2921_v9 = vld [vmem:[#allocation2 + $0x180] sm:$0xff] }
 0x300   : > { %3149 = vst [vmem:[%s4759_s4 + $0xa0] sm:$0xff] %v3629_v63  ;;  %v3632_v8 = vpack.c.bf16 %v2920_v6, %v2919_v5  ;;  %v2922_v10 = vld [vmem:[#allocation2 + $0x188] sm:$0xff]  ;;  %v2923_v11 = vld [vmem:[#allocation2 + $0x190] sm:$0xff]  ;;  %v2924_v13 = vld [vmem:[#allocation2 + $0x198] sm:$0xff] }
 0x301   : > { %3150 = vst [vmem:[%s4759_s4 + $0xa8] sm:$0xff] %v3630_v3  ;;  %v3633_v12 = vpack.c.bf16 %v2922_v10, %v2921_v9  ;;  %v2925_v14 = vld [vmem:[#allocation2 + $0x1a0] sm:$0xff]  ;;  %v2926_v15 = vld [vmem:[#allocation2 + $0x1a8] sm:$0xff]  ;;  %3151 = vst [vmem:[%s4759_s4 + $0xb0] sm:$0xff] %v3631_v7  ;;  %v3634_v16 = vpack.c.bf16 %v2924_v13, %v2923_v11 }
 0x302   : > { %3152 = vst [vmem:[%s4759_s4 + $0xb8] sm:$0xff] %v3632_v8  ;;  %v3635_v17 = vpack.c.bf16 %v2926_v15, %v2925_v14  ;;  %v2927_v18 = vld [vmem:[#allocation2 + $0x1b0] sm:$0xff]  ;;  %v2928_v19 = vld [vmem:[#allocation2 + $0x1b8] sm:$0xff]  ;;  %v2929_v20 = vld [vmem:[#allocation2 + $0x1c0] sm:$0xff] }
 0x303   : > { %3153 = vst [vmem:[%s4759_s4 + $0xc0] sm:$0xff] %v3633_v12  ;;  %v3636_v21 = vpack.c.bf16 %v2928_v19, %v2927_v18  ;;  %v2930_v22 = vld [vmem:[#allocation2 + $0x1c8] sm:$0xff]  ;;  %v2931_v23 = vld [vmem:[#allocation2 + $0x1d0] sm:$0xff]  ;;  %v2932_v24 = vld [vmem:[#allocation2 + $0x1d8] sm:$0xff] }
 0x304   : > { %3154 = vst [vmem:[%s4759_s4 + $0xc8] sm:$0xff] %v3634_v16  ;;  %3155 = vst [vmem:[%s4759_s4 + $0xd0] sm:$0xff] %v3635_v17  ;;  %v3637_v25 = vpack.c.bf16 %v2930_v22, %v2929_v20  ;;  %v3638_v26 = vpack.c.bf16 %v2932_v24, %v2931_v23  ;;  %v2933_v27 = vld [vmem:[#allocation2 + $0x1e0] sm:$0xff]  ;;  %v2934_v28 = vld [vmem:[#allocation2 + $0x1e8] sm:$0xff] }
 0x305   : > { %v2935_v29 = vld [vmem:[#allocation2 + $0x1f0] sm:$0xff]  ;;  %3156 = vst [vmem:[%s4759_s4 + $0xd8] sm:$0xff] %v3636_v21  ;;  %v3639_v30 = vpack.c.bf16 %v2934_v28, %v2933_v27  ;;  %v2936_v31 = vld [vmem:[#allocation2 + $0x1f8] sm:$0xff] }
 0x306   : > { %3157 = vst [vmem:[%s4759_s4 + $0xe0] sm:$0xff] %v3637_v25  ;;  %3158 = vst [vmem:[%s4759_s4 + $0xe8] sm:$0xff] %v3638_v26  ;;  %v3640_v32 = vpack.c.bf16 %v2936_v31, %v2935_v29 }
 0x307   : > { %3159 = vst [vmem:[%s4759_s4 + $0xf0] sm:$0xff] %v3639_v30 }
 0x308   : > { %3160 = vst [vmem:[%s4759_s4 + $0xf8] sm:$0xff] %v3640_v32 }
 0x309 PF: > { %s5263_s28 = sld [smem:[#allocation21_spill]]  ;;  %s5264_s18 = sld [smem:[#allocation28_spill]] }
 0x30a   : > { %s3176_s27 = sshll.u32 %s4759_s4, 4  ;;  %s5140_s11 = scalar_lea.sflag [#allocation8], %s273_s21  ;;  %s5136_s27 = int_to_ptr.vmem [resolvable:$true] %s3176_s27 }
 0x30b   : > { %s4256_s22 = scalar_lea.vmem %s5136_s27, 4096  ;;  %p5266_p7 = scmp.ne.s32.totalorder %s5250_s13, 0 }
 0x30c   : > { %p4257_p9 = scmp.ne.s32.totalorder %s5136_s27, %s4256_s22  ;;  %s4420_s7 = smov [#allocation11]  }
 0x30d   : > { %s4260_s17 = sshll.u32 %s4420_s7, 4  ;;  %s4261_s17 = int_to_ptr.vmem [resolvable:$false] %s4260_s17 }
 0x30e   : > { %p4258_p12 = pnand %p4257_p9, %p5266_p7  ;;  %s4262_s29 = scalar_lea.vmem %s4261_s17, 8192 }
 0x30f   : > { %s3642_s26 = sshll.u32 %s5263_s28, 12  ;;  %s5265_s23 = smov %s5264_s18 }
 0x310   : > { %s5133_s25 = scalar_lea.hbm %s5264_s18, %s3642_s26  ;;  %p4259_p1 = pneg %p4258_p12 }
 0x311   : > { %p4263_p3 = scmp.lt.s32.totalorder %s5136_s27, %s4261_s17  ;;  %p4264_p11 = scmp.lt.s32.totalorder %s4262_s29, %s4256_s22 }
 0x313   : > { %p4265_p10 = por %p4264_p11, %p4263_p3 }
 0x315   : > { %p4266_p2 = pnand %p4265_p10, %p4259_p1 }
 0x317   : > { %4269 = shalt.err (!%p4266_p2)
}
 0x318   : > { %s4270_s21 = scalar_lea.hbm %s5133_s25, 4096  ;;  %s4274_s2 = scalar_lea.hbm %s5265_s23, 16384 }
 0x319   : > { %p4271_p8 = scmp.ne.s32.totalorder %s5133_s25, %s4270_s21  ;;  %p4275_p5 = scmp.lt.u32.totalorder %s5133_s25, %s5265_s23 }
 0x31a   : > { %p4276_p0 = scmp.lt.u32.totalorder %s4274_s2, %s4270_s21  ;;  %p4278_p9 = scmp.lt.u32.totalorder %s4270_s21, %s5133_s25 }
 0x31b   : > { %p4272_p6 = pnand %p4271_p8, %p5266_p7 }
 0x31c   : > { %p4277_p13 = por %p4276_p0, %p4275_p5 }
 0x31d   : > { %p4273_p4 = pneg %p4272_p6 }
 0x31e   : > { %p4279_p12 = por %p4278_p9, %p4277_p13 }
 0x320   : > { %p4280_p1 = pnand %p4279_p12, %p4273_p4 }
 0x322   : > { %4283 = shalt.err (!%p4280_p1)
}
 0x323   : > { %s4421_s8 = smov 128   ;;  %s4422_s16 = smov 8  }
 0x324   : > { %3843 = dma.vmem_to_hbm [thread:$0]  (%p5266_p7), %s5136_s27, 4096, %s5133_s25, %s5140_s11, %s4421_s8, %s4421_s8, %s4422_s16  }
 0x325 PF: > { %p3861_p3 = scmp.ge.s32.totalorder %s4408_s20, 2  ;;  %s3191_s18 = sand.u32 1, %s4356_s0  }
 0x326   : > { %p5267_p11 = scmp.ne.s32.totalorder %s5251_s19, 0  ;;  %s3192_s22 = scalar_lea.sflag [#allocation8], %s3191_s18 }
 0x328   : > { %p3857_p10 = pnand %p3861_p3, %p5267_p11 }
 0x32a   : > { %4351 = dma.done.wait (!%p3857_p10), %s3192_s22, 4096  }
 0x32b   : > { %4353 = vsyncadd (!%p3857_p10), %s3192_s22, 4294963200  ;;  %s29_s20 = sadd.s32 1, %s4408_s20   ;;  %s5269_s16 = sld [smem:[#allocation22_spill]] }
 0x32c   : > { %p5169_p2 = scmp.ge.s32.totalorder %s29_s20, 18   ;;  %s5270_s17 = sld [smem:[#allocation23_spill]] }
 0x32d   : > { %s5271_s18 = sld [smem:[#allocation24_spill]]  ;;  %s5272_s19 = sld [smem:[#allocation25_spill]] }
 0x32e   : > { %s5273_s0 = smov %s4360_s9  ;;  %s5274_s9 = smov %s4364_s10 }
 0x32f   : > { %s5275_s10 = smov %s4580_s30  ;;  %s5276_s11 = smov %s4372_s12 }
 0x330   : > { %s5277_s12 = smov %s4376_s1  ;;  %s5278_s1 = smov %s4694_s24 }
 0x331   : > { %s5279_s13 = smov %s4384_s14  ;;  %s5280_s14 = smov %s4388_s15 }
 0x332   : > { %s5281_s15 = smov %s4588_s3  ;;  %28 = sbr.rel (!%p5169_p2) target bundleno = 32 (0x20), region = 98 }
 0x339   :  { %3197 = vsyncpa [#allocation7], 1 }
 0x33a   :  { %3199 = vsyncpa [#allocation7 + $0x1], 1 }
 0x33b   :  { %3200 = vsyncpa [#allocation10], 1 }
 0x33c   :  { %3202 = vsyncpa [#allocation10 + $0x1], 1 }
 0x33d   :  { %3203 = vsyncpa [#allocation8], 1 }
 0x33e   :  { %3205 = vsyncpa [#allocation8 + $0x1], 1 }

</bundles_post_ra>
